<compile_context>
chip_gen: v5e
topology: v5e:2x2
jax: 0.10.0
libtpu: 0.0.40
codegen_flags: <defaults>
</compile_context>

<pallas_src>
import functools

import jax
import jax.numpy as jnp
from jax import lax
from jax.experimental import pallas as pl
from jax.experimental.pallas import tpu as pltpu


def bilstm_kernel(x_ref, win_ref, whh_ref, whd_ref, b_ref, out_ref,
                  gx_buf, hcat_buf, *, T, Bp, H):
    """Fused BiLSTM forward.

    x_ref   : (T*Bp, Din)   flattened, batch-padded input
    win_ref : (Din, 8H)     [fwd gates | bwd gates], per-direction order [i f o g]
    whh_ref : (2H, 8H)      block-diagonal recurrent weights (same column layout)
    whd_ref : (2H, 128)     head weights, zero-padded to 128 output lanes
    b_ref   : (1, 128)      head bias, zero-padded
    out_ref : (T*Bp, 128)
    gx_buf  : (T*Bp, 8H)    input-projection scratch
    hcat_buf: (T*Bp, 2H)    [h_fwd | h_bwd] per (time, batch) row
    """
    G = 4 * H

    # --- Prologue: one MXU pass computes both directions' input projections.
    # Row (t*Bp + b) holds [fwd gates at time t | bwd gates at time t].
    gx_buf[...] = jnp.dot(x_ref[...], win_ref[...],
                          preferred_element_type=jnp.float32)

    whh = whh_ref[...]                          # (2H, 8H)
    h = jnp.zeros((Bp, 2 * H), jnp.float32)     # [h_fwd | h_bwd]
    c_f = jnp.zeros((Bp, H), jnp.float32)
    c_b = jnp.zeros((Bp, H), jnp.float32)

    # --- Merged fwd/bwd recurrence (fully unrolled; T is tiny).
    # Step s: forward consumes time s, backward consumes time T-1-s.
    for s in range(T):
        rec = jnp.dot(h, whh, preferred_element_type=jnp.float32)     # (Bp, 8H)
        gxf = gx_buf[s * Bp:(s + 1) * Bp, 0:G]                 # fwd, time s
        gxb = gx_buf[(T - 1 - s) * Bp:(T - s) * Bp, G:2 * G]   # bwd, time T-1-s
        gates = rec + jnp.concatenate([gxf, gxb], axis=1)      # (Bp, 8H)

        gf = gates[:, 0:G]          # forward block: [i f o g]
        gb = gates[:, G:2 * G]      # backward block: [i f o g]
        ifo_f = jax.nn.sigmoid(gf[:, 0:3 * H])
        ifo_b = jax.nn.sigmoid(gb[:, 0:3 * H])
        gg_f = jnp.tanh(gf[:, 3 * H:4 * H])
        gg_b = jnp.tanh(gb[:, 3 * H:4 * H])

        c_f = ifo_f[:, H:2 * H] * c_f + ifo_f[:, 0:H] * gg_f
        c_b = ifo_b[:, H:2 * H] * c_b + ifo_b[:, 0:H] * gg_b
        h_f = ifo_f[:, 2 * H:3 * H] * jnp.tanh(c_f)
        h_b = ifo_b[:, 2 * H:3 * H] * jnp.tanh(c_b)

        # Forward hidden belongs to time s; backward hidden to time T-1-s.
        hcat_buf[s * Bp:(s + 1) * Bp, 0:H] = h_f
        hcat_buf[(T - 1 - s) * Bp:(T - s) * Bp, H:2 * H] = h_b
        h = jnp.concatenate([h_f, h_b], axis=1)

    # --- Lane-dense linear head (zero filler columns; wrapper slices [:, :7]).
    out = jnp.dot(hcat_buf[...], whd_ref[...],
                  preferred_element_type=jnp.float32) + b_ref[...]
    out_ref[...] = out.astype(out_ref.dtype)


def _reorder_gates(w_t, H):
    """Reorder transposed PyTorch gate columns [i f g o] -> [i f o g]."""
    return jnp.concatenate(
        [w_t[:, 0:2 * H], w_t[:, 3 * H:4 * H], w_t[:, 2 * H:3 * H]], axis=1)


@jax.jit
def bilstm_forward(x, params):
    T, B, Din = x.shape
    H = params["whh_f"].shape[1]
    Bp = -(-B // 8) * 8            # pad batch to a sublane multiple (f32: 8)
    NOUT = 128                     # lane-dense padded head width (true out = 7)

    # --- Wrapper-side layout plumbing (hoisted out of the kernel). ---
    # Zero-pad the batch; padded rows compute valid garbage and are discarded.
    xp = jnp.zeros((T, Bp, Din), x.dtype).at[:, :B, :].set(x)
    x_flat = xp.reshape(T * Bp, Din)

    # Fused input-projection weights (no zero blocks): [fwd 4H | bwd 4H].
    w_in = jnp.concatenate([_reorder_gates(params["wih_f"].T, H),
                            _reorder_gates(params["wih_b"].T, H)], axis=1)

    # Block-diagonal recurrent weights: h_fwd rows feed only forward gate
    # columns, h_bwd rows only backward gate columns.
    whh_f_t = _reorder_gates(params["whh_f"].T, H)      # (H, 4H)
    whh_b_t = _reorder_gates(params["whh_b"].T, H)      # (H, 4H)
    z = jnp.zeros((H, 4 * H), jnp.float32)
    w_hh = jnp.concatenate(
        [jnp.concatenate([whh_f_t, z], axis=1),
         jnp.concatenate([z, whh_b_t], axis=1)], axis=0)  # (2H, 8H)

    # Head: pad 7 output features to 128 lanes.
    w_head = jnp.zeros((2 * H, NOUT), jnp.float32).at[:, :7].set(params["wlin"].T)
    b_head = jnp.zeros((1, NOUT), jnp.float32).at[:, :7].set(
        params["blin"].reshape(1, 7))

    kernel = functools.partial(bilstm_kernel, T=T, Bp=Bp, H=H)
    out_flat = pl.pallas_call(
        kernel,
        out_shape=jax.ShapeDtypeStruct((T * Bp, NOUT), jnp.float32),
        in_specs=[pl.BlockSpec(memory_space=pltpu.MemorySpace.VMEM)] * 5,
        out_specs=pl.BlockSpec(memory_space=pltpu.MemorySpace.VMEM),
        scratch_shapes=[
            pltpu.VMEM((T * Bp, 8 * H), jnp.float32),   # gx: both directions
            pltpu.VMEM((T * Bp, 2 * H), jnp.float32),   # [h_fwd | h_bwd]
        ],
        compiler_params=pltpu.CompilerParams(vmem_limit_bytes=32 * 1024 * 1024),
    )(x_flat, w_in, w_hh, w_head, b_head)

    return out_flat.reshape(T, Bp, NOUT)[:, :B, :7]


# ---------- pure-JAX reference (mirrors PyTorch semantics) ----------
def _lstm_dir_ref(x, wih, whh, H):
    B = x.shape[1]

    def step(carry, x_t):
        h, c = carry
        gates = x_t @ wih.T + h @ whh.T
        i = jax.nn.sigmoid(gates[:, 0:H])
        f = jax.nn.sigmoid(gates[:, H:2 * H])
        g = jnp.tanh(gates[:, 2 * H:3 * H])
        o = jax.nn.sigmoid(gates[:, 3 * H:4 * H])
        c = f * c + i * g
        h = o * jnp.tanh(c)
        return (h, c), h

    h0 = jnp.zeros((B, H), jnp.float32)
    c0 = jnp.zeros((B, H), jnp.float32)
    _, hs = lax.scan(step, (h0, c0), x)
    return hs


def ref_forward(x, p):
    H = p["whh_f"].shape[1]
    hf = _lstm_dir_ref(x, p["wih_f"], p["whh_f"], H)
    hb = _lstm_dir_ref(x[::-1], p["wih_b"], p["whh_b"], H)[::-1]
    h = jnp.concatenate([hf, hb], axis=-1)
    return h @ p["wlin"].T + p["blin"]


if __name__ == "__main__":
    # Small shapes consistent with the module: seq=8, batch=2, in=16, hidden=32.
    T, B, D_IN, H = 8, 2, 16, 32

    key = jax.random.PRNGKey(0)
    k = jax.random.split(key, 7)
    u = lambda kk, shape: jax.random.uniform(kk, shape, jnp.float32, -0.1, 0.1)

    params = {
        "wih_f": u(k[0], (4 * H, D_IN)),   # weight_ih_l0
        "whh_f": u(k[1], (4 * H, H)),      # weight_hh_l0
        "wih_b": u(k[2], (4 * H, D_IN)),   # weight_ih_l0_reverse
        "whh_b": u(k[3], (4 * H, H)),      # weight_hh_l0_reverse
        "wlin":  u(k[4], (7, 2 * H)),      # linear.weight
        "blin":  u(k[5], (1, 7)),          # linear.bias
    }
    x = jax.random.normal(k[6], (T, B, D_IN), jnp.float32)

    # TODO(synk): dropout_prob=0 (and eval-mode dropout) is identity; the
    # CrossEntropyLoss criterion is not part of forward() and is omitted.
    out = jax.block_until_ready(bilstm_forward(x, params))
    ref = jax.block_until_ready(ref_forward(x, params))

    assert out.shape == (T, B, 7)
    assert jnp.allclose(out, ref, atol=1e-4, rtol=1e-4), "mismatch vs reference"
    print("KERNEL_OK")
</pallas_src>

<mosaic_0001>
module attributes {stable_mosaic.version = 11 : i64} {
  func.func @bilstm_kernel(%arg0: memref<64x16xf32, #tpu.memory_space<vmem>>, %arg1: memref<16x256xf32, #tpu.memory_space<vmem>>, %arg2: memref<64x256xf32, #tpu.memory_space<vmem>>, %arg3: memref<64x128xf32, #tpu.memory_space<vmem>>, %arg4: memref<1x128xf32, #tpu.memory_space<vmem>>, %arg5: memref<64x128xf32, #tpu.memory_space<vmem>>, %arg6: memref<64x256xf32, #tpu.memory_space<vmem>>, %arg7: memref<64x64xf32, #tpu.memory_space<vmem>>) attributes {dimension_semantics = [], scalar_prefetch = 0 : i64, scratch_operands = 2 : i64, tpu.core_type = #tpu.core_type<tc>} {
    %c0 = arith.constant 0 : index
    %c0_0 = arith.constant 0 : index
    %0 = vector.load %arg0[%c0, %c0_0] : memref<64x16xf32, #tpu.memory_space<vmem>>, vector<64x16xf32>
    %c0_1 = arith.constant 0 : index
    %c0_2 = arith.constant 0 : index
    %1 = vector.load %arg1[%c0_1, %c0_2] : memref<16x256xf32, #tpu.memory_space<vmem>>, vector<16x256xf32>
    %cst = arith.constant dense<0.000000e+00> : vector<64x256xf32>
    %2 = tpu.matmul %0, %1, %cst {dimension_numbers = #tpu.dot_dimension_numbers<[1], [0], [0], [1], [0, 0, 1, 1], [], []>} : vector<64x16xf32>, vector<16x256xf32>, vector<64x256xf32> -> vector<64x256xf32>
    %c0_3 = arith.constant 0 : index
    %c0_4 = arith.constant 0 : index
    %3 = vector.load %arg6[%c0_3, %c0_4] : memref<64x256xf32, #tpu.memory_space<vmem>>, vector<64x256xf32>
    tpu.vector_store %arg6[%c0_3, %c0_4], %2 {strides = array<i32>} : memref<64x256xf32, #tpu.memory_space<vmem>>, vector<64x256xf32>,
    %c0_5 = arith.constant 0 : index
    %c0_6 = arith.constant 0 : index
    %4 = vector.load %arg2[%c0_5, %c0_6] : memref<64x256xf32, #tpu.memory_space<vmem>>, vector<64x256xf32>
    %cst_7 = arith.constant 0.000000e+00 : f32
    %5 = vector.broadcast %cst_7 : f32 to vector<8x64xf32>
    %cst_8 = arith.constant 0.000000e+00 : f32
    %6 = vector.broadcast %cst_8 : f32 to vector<8x32xf32>
    %cst_9 = arith.constant 0.000000e+00 : f32
    %7 = vector.broadcast %cst_9 : f32 to vector<8x32xf32>
    %cst_10 = arith.constant dense<0.000000e+00> : vector<8x256xf32>
    %8 = tpu.matmul %5, %4, %cst_10 {dimension_numbers = #tpu.dot_dimension_numbers<[1], [0], [0], [1], [0, 0, 1, 1], [], []>} : vector<8x64xf32>, vector<64x256xf32>, vector<8x256xf32> -> vector<8x256xf32>
    %c0_11 = arith.constant 0 : index
    %c0_12 = arith.constant 0 : index
    %9 = vector.load %arg6[%c0_11, %c0_12] : memref<64x256xf32, #tpu.memory_space<vmem>>, vector<8x128xf32>
    %c56 = arith.constant 56 : index
    %c128 = arith.constant 128 : index
    %10 = vector.load %arg6[%c56, %c128] : memref<64x256xf32, #tpu.memory_space<vmem>>, vector<8x128xf32>
    %11 = tpu.concatenate %9, %10 in 1 : vector<8x128xf32>, vector<8x128xf32> -> vector<8x256xf32>
    %12 = arith.addf %8, %11 : vector<8x256xf32>
    %13 = vector.extract_strided_slice %12 {offsets = [0, 0], sizes = [8, 128], strides = [1, 1]} : vector<8x256xf32> to vector<8x128xf32>
    %14 = vector.extract_strided_slice %12 {offsets = [0, 128], sizes = [8, 128], strides = [1, 1]} : vector<8x256xf32> to vector<8x128xf32>
    %15 = vector.extract_strided_slice %13 {offsets = [0, 0], sizes = [8, 96], strides = [1, 1]} : vector<8x128xf32> to vector<8x96xf32>
    %16 = arith.negf %15 : vector<8x96xf32>
    %17 = math.exp %16 : vector<8x96xf32>
    %cst_13 = arith.constant 1.000000e+00 : f32
    %18 = vector.broadcast %cst_13 : f32 to vector<8x96xf32>
    %19 = arith.addf %18, %17 : vector<8x96xf32>
    %20 = arith.divf %18, %19 : vector<8x96xf32>
    %21 = vector.extract_strided_slice %14 {offsets = [0, 0], sizes = [8, 96], strides = [1, 1]} : vector<8x128xf32> to vector<8x96xf32>
    %22 = arith.negf %21 : vector<8x96xf32>
    %23 = math.exp %22 : vector<8x96xf32>
    %cst_14 = arith.constant 1.000000e+00 : f32
    %24 = vector.broadcast %cst_14 : f32 to vector<8x96xf32>
    %25 = arith.addf %24, %23 : vector<8x96xf32>
    %26 = arith.divf %24, %25 : vector<8x96xf32>
    %27 = vector.extract_strided_slice %13 {offsets = [0, 96], sizes = [8, 32], strides = [1, 1]} : vector<8x128xf32> to vector<8x32xf32>
    %28 = math.tanh %27 : vector<8x32xf32>
    %29 = vector.extract_strided_slice %14 {offsets = [0, 96], sizes = [8, 32], strides = [1, 1]} : vector<8x128xf32> to vector<8x32xf32>
    %30 = math.tanh %29 : vector<8x32xf32>
    %31 = vector.extract_strided_slice %20 {offsets = [0, 32], sizes = [8, 32], strides = [1, 1]} : vector<8x96xf32> to vector<8x32xf32>
    %32 = arith.mulf %31, %6 : vector<8x32xf32>
    %33 = vector.extract_strided_slice %20 {offsets = [0, 0], sizes = [8, 32], strides = [1, 1]} : vector<8x96xf32> to vector<8x32xf32>
    %34 = arith.mulf %33, %28 : vector<8x32xf32>
    %35 = arith.addf %32, %34 : vector<8x32xf32>
    %36 = vector.extract_strided_slice %26 {offsets = [0, 32], sizes = [8, 32], strides = [1, 1]} : vector<8x96xf32> to vector<8x32xf32>
    %37 = arith.mulf %36, %7 : vector<8x32xf32>
    %38 = vector.extract_strided_slice %26 {offsets = [0, 0], sizes = [8, 32], strides = [1, 1]} : vector<8x96xf32> to vector<8x32xf32>
    %39 = arith.mulf %38, %30 : vector<8x32xf32>
    %40 = arith.addf %37, %39 : vector<8x32xf32>
    %41 = vector.extract_strided_slice %20 {offsets = [0, 64], sizes = [8, 32], strides = [1, 1]} : vector<8x96xf32> to vector<8x32xf32>
    %42 = math.tanh %35 : vector<8x32xf32>
    %43 = arith.mulf %41, %42 : vector<8x32xf32>
    %44 = vector.extract_strided_slice %26 {offsets = [0, 64], sizes = [8, 32], strides = [1, 1]} : vector<8x96xf32> to vector<8x32xf32>
    %45 = math.tanh %40 : vector<8x32xf32>
    %46 = arith.mulf %44, %45 : vector<8x32xf32>
    %c0_15 = arith.constant 0 : index
    %c0_16 = arith.constant 0 : index
    %47 = vector.load %arg7[%c0_15, %c0_16] : memref<64x64xf32, #tpu.memory_space<vmem>>, vector<8x32xf32>
    tpu.vector_store %arg7[%c0_15, %c0_16], %43 {strides = array<i32>} : memref<64x64xf32, #tpu.memory_space<vmem>>, vector<8x32xf32>,
    %c56_17 = arith.constant 56 : index
    %c32 = arith.constant 32 : index
    %48 = vector.load %arg7[%c56_17, %c32] : memref<64x64xf32, #tpu.memory_space<vmem>>, vector<8x32xf32>
    tpu.vector_store %arg7[%c56_17, %c32], %46 {strides = array<i32>} : memref<64x64xf32, #tpu.memory_space<vmem>>, vector<8x32xf32>,
    %49 = tpu.concatenate %43, %46 in 1 : vector<8x32xf32>, vector<8x32xf32> -> vector<8x64xf32>
    %cst_18 = arith.constant dense<0.000000e+00> : vector<8x256xf32>
    %50 = tpu.matmul %49, %4, %cst_18 {dimension_numbers = #tpu.dot_dimension_numbers<[1], [0], [0], [1], [0, 0, 1, 1], [], []>} : vector<8x64xf32>, vector<64x256xf32>, vector<8x256xf32> -> vector<8x256xf32>
    %c8 = arith.constant 8 : index
    %c0_19 = arith.constant 0 : index
    %51 = vector.load %arg6[%c8, %c0_19] : memref<64x256xf32, #tpu.memory_space<vmem>>, vector<8x128xf32>
    %c48 = arith.constant 48 : index
    %c128_20 = arith.constant 128 : index
    %52 = vector.load %arg6[%c48, %c128_20] : memref<64x256xf32, #tpu.memory_space<vmem>>, vector<8x128xf32>
    %53 = tpu.concatenate %51, %52 in 1 : vector<8x128xf32>, vector<8x128xf32> -> vector<8x256xf32>
    %54 = arith.addf %50, %53 : vector<8x256xf32>
    %55 = vector.extract_strided_slice %54 {offsets = [0, 0], sizes = [8, 128], strides = [1, 1]} : vector<8x256xf32> to vector<8x128xf32>
    %56 = vector.extract_strided_slice %54 {offsets = [0, 128], sizes = [8, 128], strides = [1, 1]} : vector<8x256xf32> to vector<8x128xf32>
    %57 = vector.extract_strided_slice %55 {offsets = [0, 0], sizes = [8, 96], strides = [1, 1]} : vector<8x128xf32> to vector<8x96xf32>
    %58 = arith.negf %57 : vector<8x96xf32>
    %59 = math.exp %58 : vector<8x96xf32>
    %cst_21 = arith.constant 1.000000e+00 : f32
    %60 = vector.broadcast %cst_21 : f32 to vector<8x96xf32>
    %61 = arith.addf %60, %59 : vector<8x96xf32>
    %62 = arith.divf %60, %61 : vector<8x96xf32>
    %63 = vector.extract_strided_slice %56 {offsets = [0, 0], sizes = [8, 96], strides = [1, 1]} : vector<8x128xf32> to vector<8x96xf32>
    %64 = arith.negf %63 : vector<8x96xf32>
    %65 = math.exp %64 : vector<8x96xf32>
    %cst_22 = arith.constant 1.000000e+00 : f32
    %66 = vector.broadcast %cst_22 : f32 to vector<8x96xf32>
    %67 = arith.addf %66, %65 : vector<8x96xf32>
    %68 = arith.divf %66, %67 : vector<8x96xf32>
    %69 = vector.extract_strided_slice %55 {offsets = [0, 96], sizes = [8, 32], strides = [1, 1]} : vector<8x128xf32> to vector<8x32xf32>
    %70 = math.tanh %69 : vector<8x32xf32>
    %71 = vector.extract_strided_slice %56 {offsets = [0, 96], sizes = [8, 32], strides = [1, 1]} : vector<8x128xf32> to vector<8x32xf32>
    %72 = math.tanh %71 : vector<8x32xf32>
    %73 = vector.extract_strided_slice %62 {offsets = [0, 32], sizes = [8, 32], strides = [1, 1]} : vector<8x96xf32> to vector<8x32xf32>
    %74 = arith.mulf %73, %35 : vector<8x32xf32>
    %75 = vector.extract_strided_slice %62 {offsets = [0, 0], sizes = [8, 32], strides = [1, 1]} : vector<8x96xf32> to vector<8x32xf32>
    %76 = arith.mulf %75, %70 : vector<8x32xf32>
    %77 = arith.addf %74, %76 : vector<8x32xf32>
    %78 = vector.extract_strided_slice %68 {offsets = [0, 32], sizes = [8, 32], strides = [1, 1]} : vector<8x96xf32> to vector<8x32xf32>
    %79 = arith.mulf %78, %40 : vector<8x32xf32>
    %80 = vector.extract_strided_slice %68 {offsets = [0, 0], sizes = [8, 32], strides = [1, 1]} : vector<8x96xf32> to vector<8x32xf32>
    %81 = arith.mulf %80, %72 : vector<8x32xf32>
    %82 = arith.addf %79, %81 : vector<8x32xf32>
    %83 = vector.extract_strided_slice %62 {offsets = [0, 64], sizes = [8, 32], strides = [1, 1]} : vector<8x96xf32> to vector<8x32xf32>
    %84 = math.tanh %77 : vector<8x32xf32>
    %85 = arith.mulf %83, %84 : vector<8x32xf32>
    %86 = vector.extract_strided_slice %68 {offsets = [0, 64], sizes = [8, 32], strides = [1, 1]} : vector<8x96xf32> to vector<8x32xf32>
    %87 = math.tanh %82 : vector<8x32xf32>
    %88 = arith.mulf %86, %87 : vector<8x32xf32>
    %c8_23 = arith.constant 8 : index
    %c0_24 = arith.constant 0 : index
    %89 = vector.load %arg7[%c8_23, %c0_24] : memref<64x64xf32, #tpu.memory_space<vmem>>, vector<8x32xf32>
    tpu.vector_store %arg7[%c8_23, %c0_24], %85 {strides = array<i32>} : memref<64x64xf32, #tpu.memory_space<vmem>>, vector<8x32xf32>,
    %c48_25 = arith.constant 48 : index
    %c32_26 = arith.constant 32 : index
    %90 = vector.load %arg7[%c48_25, %c32_26] : memref<64x64xf32, #tpu.memory_space<vmem>>, vector<8x32xf32>
    tpu.vector_store %arg7[%c48_25, %c32_26], %88 {strides = array<i32>} : memref<64x64xf32, #tpu.memory_space<vmem>>, vector<8x32xf32>,
    %91 = tpu.concatenate %85, %88 in 1 : vector<8x32xf32>, vector<8x32xf32> -> vector<8x64xf32>
    %cst_27 = arith.constant dense<0.000000e+00> : vector<8x256xf32>
    %92 = tpu.matmul %91, %4, %cst_27 {dimension_numbers = #tpu.dot_dimension_numbers<[1], [0], [0], [1], [0, 0, 1, 1], [], []>} : vector<8x64xf32>, vector<64x256xf32>, vector<8x256xf32> -> vector<8x256xf32>
    %c16 = arith.constant 16 : index
    %c0_28 = arith.constant 0 : index
    %93 = vector.load %arg6[%c16, %c0_28] : memref<64x256xf32, #tpu.memory_space<vmem>>, vector<8x128xf32>
    %c40 = arith.constant 40 : index
    %c128_29 = arith.constant 128 : index
    %94 = vector.load %arg6[%c40, %c128_29] : memref<64x256xf32, #tpu.memory_space<vmem>>, vector<8x128xf32>
    %95 = tpu.concatenate %93, %94 in 1 : vector<8x128xf32>, vector<8x128xf32> -> vector<8x256xf32>
    %96 = arith.addf %92, %95 : vector<8x256xf32>
    %97 = vector.extract_strided_slice %96 {offsets = [0, 0], sizes = [8, 128], strides = [1, 1]} : vector<8x256xf32> to vector<8x128xf32>
    %98 = vector.extract_strided_slice %96 {offsets = [0, 128], sizes = [8, 128], strides = [1, 1]} : vector<8x256xf32> to vector<8x128xf32>
    %99 = vector.extract_strided_slice %97 {offsets = [0, 0], sizes = [8, 96], strides = [1, 1]} : vector<8x128xf32> to vector<8x96xf32>
    %100 = arith.negf %99 : vector<8x96xf32>
    %101 = math.exp %100 : vector<8x96xf32>
    %cst_30 = arith.constant 1.000000e+00 : f32
    %102 = vector.broadcast %cst_30 : f32 to vector<8x96xf32>
    %103 = arith.addf %102, %101 : vector<8x96xf32>
    %104 = arith.divf %102, %103 : vector<8x96xf32>
    %105 = vector.extract_strided_slice %98 {offsets = [0, 0], sizes = [8, 96], strides = [1, 1]} : vector<8x128xf32> to vector<8x96xf32>
    %106 = arith.negf %105 : vector<8x96xf32>
    %107 = math.exp %106 : vector<8x96xf32>
    %cst_31 = arith.constant 1.000000e+00 : f32
    %108 = vector.broadcast %cst_31 : f32 to vector<8x96xf32>
    %109 = arith.addf %108, %107 : vector<8x96xf32>
    %110 = arith.divf %108, %109 : vector<8x96xf32>
    %111 = vector.extract_strided_slice %97 {offsets = [0, 96], sizes = [8, 32], strides = [1, 1]} : vector<8x128xf32> to vector<8x32xf32>
    %112 = math.tanh %111 : vector<8x32xf32>
    %113 = vector.extract_strided_slice %98 {offsets = [0, 96], sizes = [8, 32], strides = [1, 1]} : vector<8x128xf32> to vector<8x32xf32>
    %114 = math.tanh %113 : vector<8x32xf32>
    %115 = vector.extract_strided_slice %104 {offsets = [0, 32], sizes = [8, 32], strides = [1, 1]} : vector<8x96xf32> to vector<8x32xf32>
    %116 = arith.mulf %115, %77 : vector<8x32xf32>
    %117 = vector.extract_strided_slice %104 {offsets = [0, 0], sizes = [8, 32], strides = [1, 1]} : vector<8x96xf32> to vector<8x32xf32>
    %118 = arith.mulf %117, %112 : vector<8x32xf32>
    %119 = arith.addf %116, %118 : vector<8x32xf32>
    %120 = vector.extract_strided_slice %110 {offsets = [0, 32], sizes = [8, 32], strides = [1, 1]} : vector<8x96xf32> to vector<8x32xf32>
    %121 = arith.mulf %120, %82 : vector<8x32xf32>
    %122 = vector.extract_strided_slice %110 {offsets = [0, 0], sizes = [8, 32], strides = [1, 1]} : vector<8x96xf32> to vector<8x32xf32>
    %123 = arith.mulf %122, %114 : vector<8x32xf32>
    %124 = arith.addf %121, %123 : vector<8x32xf32>
    %125 = vector.extract_strided_slice %104 {offsets = [0, 64], sizes = [8, 32], strides = [1, 1]} : vector<8x96xf32> to vector<8x32xf32>
    %126 = math.tanh %119 : vector<8x32xf32>
    %127 = arith.mulf %125, %126 : vector<8x32xf32>
    %128 = vector.extract_strided_slice %110 {offsets = [0, 64], sizes = [8, 32], strides = [1, 1]} : vector<8x96xf32> to vector<8x32xf32>
    %129 = math.tanh %124 : vector<8x32xf32>
    %130 = arith.mulf %128, %129 : vector<8x32xf32>
    %c16_32 = arith.constant 16 : index
    %c0_33 = arith.constant 0 : index
    %131 = vector.load %arg7[%c16_32, %c0_33] : memref<64x64xf32, #tpu.memory_space<vmem>>, vector<8x32xf32>
    tpu.vector_store %arg7[%c16_32, %c0_33], %127 {strides = array<i32>} : memref<64x64xf32, #tpu.memory_space<vmem>>, vector<8x32xf32>,
    %c40_34 = arith.constant 40 : index
    %c32_35 = arith.constant 32 : index
    %132 = vector.load %arg7[%c40_34, %c32_35] : memref<64x64xf32, #tpu.memory_space<vmem>>, vector<8x32xf32>
    tpu.vector_store %arg7[%c40_34, %c32_35], %130 {strides = array<i32>} : memref<64x64xf32, #tpu.memory_space<vmem>>, vector<8x32xf32>,
    %133 = tpu.concatenate %127, %130 in 1 : vector<8x32xf32>, vector<8x32xf32> -> vector<8x64xf32>
    %cst_36 = arith.constant dense<0.000000e+00> : vector<8x256xf32>
    %134 = tpu.matmul %133, %4, %cst_36 {dimension_numbers = #tpu.dot_dimension_numbers<[1], [0], [0], [1], [0, 0, 1, 1], [], []>} : vector<8x64xf32>, vector<64x256xf32>, vector<8x256xf32> -> vector<8x256xf32>
    %c24 = arith.constant 24 : index
    %c0_37 = arith.constant 0 : index
    %135 = vector.load %arg6[%c24, %c0_37] : memref<64x256xf32, #tpu.memory_space<vmem>>, vector<8x128xf32>
    %c32_38 = arith.constant 32 : index
    %c128_39 = arith.constant 128 : index
    %136 = vector.load %arg6[%c32_38, %c128_39] : memref<64x256xf32, #tpu.memory_space<vmem>>, vector<8x128xf32>
    %137 = tpu.concatenate %135, %136 in 1 : vector<8x128xf32>, vector<8x128xf32> -> vector<8x256xf32>
    %138 = arith.addf %134, %137 : vector<8x256xf32>
    %139 = vector.extract_strided_slice %138 {offsets = [0, 0], sizes = [8, 128], strides = [1, 1]} : vector<8x256xf32> to vector<8x128xf32>
    %140 = vector.extract_strided_slice %138 {offsets = [0, 128], sizes = [8, 128], strides = [1, 1]} : vector<8x256xf32> to vector<8x128xf32>
    %141 = vector.extract_strided_slice %139 {offsets = [0, 0], sizes = [8, 96], strides = [1, 1]} : vector<8x128xf32> to vector<8x96xf32>
    %142 = arith.negf %141 : vector<8x96xf32>
    %143 = math.exp %142 : vector<8x96xf32>
    %cst_40 = arith.constant 1.000000e+00 : f32
    %144 = vector.broadcast %cst_40 : f32 to vector<8x96xf32>
    %145 = arith.addf %144, %143 : vector<8x96xf32>
    %146 = arith.divf %144, %145 : vector<8x96xf32>
    %147 = vector.extract_strided_slice %140 {offsets = [0, 0], sizes = [8, 96], strides = [1, 1]} : vector<8x128xf32> to vector<8x96xf32>
    %148 = arith.negf %147 : vector<8x96xf32>
    %149 = math.exp %148 : vector<8x96xf32>
    %cst_41 = arith.constant 1.000000e+00 : f32
    %150 = vector.broadcast %cst_41 : f32 to vector<8x96xf32>
    %151 = arith.addf %150, %149 : vector<8x96xf32>
    %152 = arith.divf %150, %151 : vector<8x96xf32>
    %153 = vector.extract_strided_slice %139 {offsets = [0, 96], sizes = [8, 32], strides = [1, 1]} : vector<8x128xf32> to vector<8x32xf32>
    %154 = math.tanh %153 : vector<8x32xf32>
    %155 = vector.extract_strided_slice %140 {offsets = [0, 96], sizes = [8, 32], strides = [1, 1]} : vector<8x128xf32> to vector<8x32xf32>
    %156 = math.tanh %155 : vector<8x32xf32>
    %157 = vector.extract_strided_slice %146 {offsets = [0, 32], sizes = [8, 32], strides = [1, 1]} : vector<8x96xf32> to vector<8x32xf32>
    %158 = arith.mulf %157, %119 : vector<8x32xf32>
    %159 = vector.extract_strided_slice %146 {offsets = [0, 0], sizes = [8, 32], strides = [1, 1]} : vector<8x96xf32> to vector<8x32xf32>
    %160 = arith.mulf %159, %154 : vector<8x32xf32>
    %161 = arith.addf %158, %160 : vector<8x32xf32>
    %162 = vector.extract_strided_slice %152 {offsets = [0, 32], sizes = [8, 32], strides = [1, 1]} : vector<8x96xf32> to vector<8x32xf32>
    %163 = arith.mulf %162, %124 : vector<8x32xf32>
    %164 = vector.extract_strided_slice %152 {offsets = [0, 0], sizes = [8, 32], strides = [1, 1]} : vector<8x96xf32> to vector<8x32xf32>
    %165 = arith.mulf %164, %156 : vector<8x32xf32>
    %166 = arith.addf %163, %165 : vector<8x32xf32>
    %167 = vector.extract_strided_slice %146 {offsets = [0, 64], sizes = [8, 32], strides = [1, 1]} : vector<8x96xf32> to vector<8x32xf32>
    %168 = math.tanh %161 : vector<8x32xf32>
    %169 = arith.mulf %167, %168 : vector<8x32xf32>
    %170 = vector.extract_strided_slice %152 {offsets = [0, 64], sizes = [8, 32], strides = [1, 1]} : vector<8x96xf32> to vector<8x32xf32>
    %171 = math.tanh %166 : vector<8x32xf32>
    %172 = arith.mulf %170, %171 : vector<8x32xf32>
    %c24_42 = arith.constant 24 : index
    %c0_43 = arith.constant 0 : index
    %173 = vector.load %arg7[%c24_42, %c0_43] : memref<64x64xf32, #tpu.memory_space<vmem>>, vector<8x32xf32>
    tpu.vector_store %arg7[%c24_42, %c0_43], %169 {strides = array<i32>} : memref<64x64xf32, #tpu.memory_space<vmem>>, vector<8x32xf32>,
    %c32_44 = arith.constant 32 : index
    %c32_45 = arith.constant 32 : index
    %174 = vector.load %arg7[%c32_44, %c32_45] : memref<64x64xf32, #tpu.memory_space<vmem>>, vector<8x32xf32>
    tpu.vector_store %arg7[%c32_44, %c32_45], %172 {strides = array<i32>} : memref<64x64xf32, #tpu.memory_space<vmem>>, vector<8x32xf32>,
    %175 = tpu.concatenate %169, %172 in 1 : vector<8x32xf32>, vector<8x32xf32> -> vector<8x64xf32>
    %cst_46 = arith.constant dense<0.000000e+00> : vector<8x256xf32>
    %176 = tpu.matmul %175, %4, %cst_46 {dimension_numbers = #tpu.dot_dimension_numbers<[1], [0], [0], [1], [0, 0, 1, 1], [], []>} : vector<8x64xf32>, vector<64x256xf32>, vector<8x256xf32> -> vector<8x256xf32>
    %c32_47 = arith.constant 32 : index
    %c0_48 = arith.constant 0 : index
    %177 = vector.load %arg6[%c32_47, %c0_48] : memref<64x256xf32, #tpu.memory_space<vmem>>, vector<8x128xf32>
    %c24_49 = arith.constant 24 : index
    %c128_50 = arith.constant 128 : index
    %178 = vector.load %arg6[%c24_49, %c128_50] : memref<64x256xf32, #tpu.memory_space<vmem>>, vector<8x128xf32>
    %179 = tpu.concatenate %177, %178 in 1 : vector<8x128xf32>, vector<8x128xf32> -> vector<8x256xf32>
    %180 = arith.addf %176, %179 : vector<8x256xf32>
    %181 = vector.extract_strided_slice %180 {offsets = [0, 0], sizes = [8, 128], strides = [1, 1]} : vector<8x256xf32> to vector<8x128xf32>
    %182 = vector.extract_strided_slice %180 {offsets = [0, 128], sizes = [8, 128], strides = [1, 1]} : vector<8x256xf32> to vector<8x128xf32>
    %183 = vector.extract_strided_slice %181 {offsets = [0, 0], sizes = [8, 96], strides = [1, 1]} : vector<8x128xf32> to vector<8x96xf32>
    %184 = arith.negf %183 : vector<8x96xf32>
    %185 = math.exp %184 : vector<8x96xf32>
    %cst_51 = arith.constant 1.000000e+00 : f32
    %186 = vector.broadcast %cst_51 : f32 to vector<8x96xf32>
    %187 = arith.addf %186, %185 : vector<8x96xf32>
    %188 = arith.divf %186, %187 : vector<8x96xf32>
    %189 = vector.extract_strided_slice %182 {offsets = [0, 0], sizes = [8, 96], strides = [1, 1]} : vector<8x128xf32> to vector<8x96xf32>
    %190 = arith.negf %189 : vector<8x96xf32>
    %191 = math.exp %190 : vector<8x96xf32>
    %cst_52 = arith.constant 1.000000e+00 : f32
    %192 = vector.broadcast %cst_52 : f32 to vector<8x96xf32>
    %193 = arith.addf %192, %191 : vector<8x96xf32>
    %194 = arith.divf %192, %193 : vector<8x96xf32>
    %195 = vector.extract_strided_slice %181 {offsets = [0, 96], sizes = [8, 32], strides = [1, 1]} : vector<8x128xf32> to vector<8x32xf32>
    %196 = math.tanh %195 : vector<8x32xf32>
    %197 = vector.extract_strided_slice %182 {offsets = [0, 96], sizes = [8, 32], strides = [1, 1]} : vector<8x128xf32> to vector<8x32xf32>
    %198 = math.tanh %197 : vector<8x32xf32>
    %199 = vector.extract_strided_slice %188 {offsets = [0, 32], sizes = [8, 32], strides = [1, 1]} : vector<8x96xf32> to vector<8x32xf32>
    %200 = arith.mulf %199, %161 : vector<8x32xf32>
    %201 = vector.extract_strided_slice %188 {offsets = [0, 0], sizes = [8, 32], strides = [1, 1]} : vector<8x96xf32> to vector<8x32xf32>
    %202 = arith.mulf %201, %196 : vector<8x32xf32>
    %203 = arith.addf %200, %202 : vector<8x32xf32>
    %204 = vector.extract_strided_slice %194 {offsets = [0, 32], sizes = [8, 32], strides = [1, 1]} : vector<8x96xf32> to vector<8x32xf32>
    %205 = arith.mulf %204, %166 : vector<8x32xf32>
    %206 = vector.extract_strided_slice %194 {offsets = [0, 0], sizes = [8, 32], strides = [1, 1]} : vector<8x96xf32> to vector<8x32xf32>
    %207 = arith.mulf %206, %198 : vector<8x32xf32>
    %208 = arith.addf %205, %207 : vector<8x32xf32>
    %209 = vector.extract_strided_slice %188 {offsets = [0, 64], sizes = [8, 32], strides = [1, 1]} : vector<8x96xf32> to vector<8x32xf32>
    %210 = math.tanh %203 : vector<8x32xf32>
    %211 = arith.mulf %209, %210 : vector<8x32xf32>
    %212 = vector.extract_strided_slice %194 {offsets = [0, 64], sizes = [8, 32], strides = [1, 1]} : vector<8x96xf32> to vector<8x32xf32>
    %213 = math.tanh %208 : vector<8x32xf32>
    %214 = arith.mulf %212, %213 : vector<8x32xf32>
    %c32_53 = arith.constant 32 : index
    %c0_54 = arith.constant 0 : index
    %215 = vector.load %arg7[%c32_53, %c0_54] : memref<64x64xf32, #tpu.memory_space<vmem>>, vector<8x32xf32>
    tpu.vector_store %arg7[%c32_53, %c0_54], %211 {strides = array<i32>} : memref<64x64xf32, #tpu.memory_space<vmem>>, vector<8x32xf32>,
    %c24_55 = arith.constant 24 : index
    %c32_56 = arith.constant 32 : index
    %216 = vector.load %arg7[%c24_55, %c32_56] : memref<64x64xf32, #tpu.memory_space<vmem>>, vector<8x32xf32>
    tpu.vector_store %arg7[%c24_55, %c32_56], %214 {strides = array<i32>} : memref<64x64xf32, #tpu.memory_space<vmem>>, vector<8x32xf32>,
    %217 = tpu.concatenate %211, %214 in 1 : vector<8x32xf32>, vector<8x32xf32> -> vector<8x64xf32>
    %cst_57 = arith.constant dense<0.000000e+00> : vector<8x256xf32>
    %218 = tpu.matmul %217, %4, %cst_57 {dimension_numbers = #tpu.dot_dimension_numbers<[1], [0], [0], [1], [0, 0, 1, 1], [], []>} : vector<8x64xf32>, vector<64x256xf32>, vector<8x256xf32> -> vector<8x256xf32>
    %c40_58 = arith.constant 40 : index
    %c0_59 = arith.constant 0 : index
    %219 = vector.load %arg6[%c40_58, %c0_59] : memref<64x256xf32, #tpu.memory_space<vmem>>, vector<8x128xf32>
    %c16_60 = arith.constant 16 : index
    %c128_61 = arith.constant 128 : index
    %220 = vector.load %arg6[%c16_60, %c128_61] : memref<64x256xf32, #tpu.memory_space<vmem>>, vector<8x128xf32>
    %221 = tpu.concatenate %219, %220 in 1 : vector<8x128xf32>, vector<8x128xf32> -> vector<8x256xf32>
    %222 = arith.addf %218, %221 : vector<8x256xf32>
    %223 = vector.extract_strided_slice %222 {offsets = [0, 0], sizes = [8, 128], strides = [1, 1]} : vector<8x256xf32> to vector<8x128xf32>
    %224 = vector.extract_strided_slice %222 {offsets = [0, 128], sizes = [8, 128], strides = [1, 1]} : vector<8x256xf32> to vector<8x128xf32>
    %225 = vector.extract_strided_slice %223 {offsets = [0, 0], sizes = [8, 96], strides = [1, 1]} : vector<8x128xf32> to vector<8x96xf32>
    %226 = arith.negf %225 : vector<8x96xf32>
    %227 = math.exp %226 : vector<8x96xf32>
    %cst_62 = arith.constant 1.000000e+00 : f32
    %228 = vector.broadcast %cst_62 : f32 to vector<8x96xf32>
    %229 = arith.addf %228, %227 : vector<8x96xf32>
    %230 = arith.divf %228, %229 : vector<8x96xf32>
    %231 = vector.extract_strided_slice %224 {offsets = [0, 0], sizes = [8, 96], strides = [1, 1]} : vector<8x128xf32> to vector<8x96xf32>
    %232 = arith.negf %231 : vector<8x96xf32>
    %233 = math.exp %232 : vector<8x96xf32>
    %cst_63 = arith.constant 1.000000e+00 : f32
    %234 = vector.broadcast %cst_63 : f32 to vector<8x96xf32>
    %235 = arith.addf %234, %233 : vector<8x96xf32>
    %236 = arith.divf %234, %235 : vector<8x96xf32>
    %237 = vector.extract_strided_slice %223 {offsets = [0, 96], sizes = [8, 32], strides = [1, 1]} : vector<8x128xf32> to vector<8x32xf32>
    %238 = math.tanh %237 : vector<8x32xf32>
    %239 = vector.extract_strided_slice %224 {offsets = [0, 96], sizes = [8, 32], strides = [1, 1]} : vector<8x128xf32> to vector<8x32xf32>
    %240 = math.tanh %239 : vector<8x32xf32>
    %241 = vector.extract_strided_slice %230 {offsets = [0, 32], sizes = [8, 32], strides = [1, 1]} : vector<8x96xf32> to vector<8x32xf32>
    %242 = arith.mulf %241, %203 : vector<8x32xf32>
    %243 = vector.extract_strided_slice %230 {offsets = [0, 0], sizes = [8, 32], strides = [1, 1]} : vector<8x96xf32> to vector<8x32xf32>
    %244 = arith.mulf %243, %238 : vector<8x32xf32>
    %245 = arith.addf %242, %244 : vector<8x32xf32>
    %246 = vector.extract_strided_slice %236 {offsets = [0, 32], sizes = [8, 32], strides = [1, 1]} : vector<8x96xf32> to vector<8x32xf32>
    %247 = arith.mulf %246, %208 : vector<8x32xf32>
    %248 = vector.extract_strided_slice %236 {offsets = [0, 0], sizes = [8, 32], strides = [1, 1]} : vector<8x96xf32> to vector<8x32xf32>
    %249 = arith.mulf %248, %240 : vector<8x32xf32>
    %250 = arith.addf %247, %249 : vector<8x32xf32>
    %251 = vector.extract_strided_slice %230 {offsets = [0, 64], sizes = [8, 32], strides = [1, 1]} : vector<8x96xf32> to vector<8x32xf32>
    %252 = math.tanh %245 : vector<8x32xf32>
    %253 = arith.mulf %251, %252 : vector<8x32xf32>
    %254 = vector.extract_strided_slice %236 {offsets = [0, 64], sizes = [8, 32], strides = [1, 1]} : vector<8x96xf32> to vector<8x32xf32>
    %255 = math.tanh %250 : vector<8x32xf32>
    %256 = arith.mulf %254, %255 : vector<8x32xf32>
    %c40_64 = arith.constant 40 : index
    %c0_65 = arith.constant 0 : index
    %257 = vector.load %arg7[%c40_64, %c0_65] : memref<64x64xf32, #tpu.memory_space<vmem>>, vector<8x32xf32>
    tpu.vector_store %arg7[%c40_64, %c0_65], %253 {strides = array<i32>} : memref<64x64xf32, #tpu.memory_space<vmem>>, vector<8x32xf32>,
    %c16_66 = arith.constant 16 : index
    %c32_67 = arith.constant 32 : index
    %258 = vector.load %arg7[%c16_66, %c32_67] : memref<64x64xf32, #tpu.memory_space<vmem>>, vector<8x32xf32>
    tpu.vector_store %arg7[%c16_66, %c32_67], %256 {strides = array<i32>} : memref<64x64xf32, #tpu.memory_space<vmem>>, vector<8x32xf32>,
    %259 = tpu.concatenate %253, %256 in 1 : vector<8x32xf32>, vector<8x32xf32> -> vector<8x64xf32>
    %cst_68 = arith.constant dense<0.000000e+00> : vector<8x256xf32>
    %260 = tpu.matmul %259, %4, %cst_68 {dimension_numbers = #tpu.dot_dimension_numbers<[1], [0], [0], [1], [0, 0, 1, 1], [], []>} : vector<8x64xf32>, vector<64x256xf32>, vector<8x256xf32> -> vector<8x256xf32>
    %c48_69 = arith.constant 48 : index
    %c0_70 = arith.constant 0 : index
    %261 = vector.load %arg6[%c48_69, %c0_70] : memref<64x256xf32, #tpu.memory_space<vmem>>, vector<8x128xf32>
    %c8_71 = arith.constant 8 : index
    %c128_72 = arith.constant 128 : index
    %262 = vector.load %arg6[%c8_71, %c128_72] : memref<64x256xf32, #tpu.memory_space<vmem>>, vector<8x128xf32>
    %263 = tpu.concatenate %261, %262 in 1 : vector<8x128xf32>, vector<8x128xf32> -> vector<8x256xf32>
    %264 = arith.addf %260, %263 : vector<8x256xf32>
    %265 = vector.extract_strided_slice %264 {offsets = [0, 0], sizes = [8, 128], strides = [1, 1]} : vector<8x256xf32> to vector<8x128xf32>
    %266 = vector.extract_strided_slice %264 {offsets = [0, 128], sizes = [8, 128], strides = [1, 1]} : vector<8x256xf32> to vector<8x128xf32>
    %267 = vector.extract_strided_slice %265 {offsets = [0, 0], sizes = [8, 96], strides = [1, 1]} : vector<8x128xf32> to vector<8x96xf32>
    %268 = arith.negf %267 : vector<8x96xf32>
    %269 = math.exp %268 : vector<8x96xf32>
    %cst_73 = arith.constant 1.000000e+00 : f32
    %270 = vector.broadcast %cst_73 : f32 to vector<8x96xf32>
    %271 = arith.addf %270, %269 : vector<8x96xf32>
    %272 = arith.divf %270, %271 : vector<8x96xf32>
    %273 = vector.extract_strided_slice %266 {offsets = [0, 0], sizes = [8, 96], strides = [1, 1]} : vector<8x128xf32> to vector<8x96xf32>
    %274 = arith.negf %273 : vector<8x96xf32>
    %275 = math.exp %274 : vector<8x96xf32>
    %cst_74 = arith.constant 1.000000e+00 : f32
    %276 = vector.broadcast %cst_74 : f32 to vector<8x96xf32>
    %277 = arith.addf %276, %275 : vector<8x96xf32>
    %278 = arith.divf %276, %277 : vector<8x96xf32>
    %279 = vector.extract_strided_slice %265 {offsets = [0, 96], sizes = [8, 32], strides = [1, 1]} : vector<8x128xf32> to vector<8x32xf32>
    %280 = math.tanh %279 : vector<8x32xf32>
    %281 = vector.extract_strided_slice %266 {offsets = [0, 96], sizes = [8, 32], strides = [1, 1]} : vector<8x128xf32> to vector<8x32xf32>
    %282 = math.tanh %281 : vector<8x32xf32>
    %283 = vector.extract_strided_slice %272 {offsets = [0, 32], sizes = [8, 32], strides = [1, 1]} : vector<8x96xf32> to vector<8x32xf32>
    %284 = arith.mulf %283, %245 : vector<8x32xf32>
    %285 = vector.extract_strided_slice %272 {offsets = [0, 0], sizes = [8, 32], strides = [1, 1]} : vector<8x96xf32> to vector<8x32xf32>
    %286 = arith.mulf %285, %280 : vector<8x32xf32>
    %287 = arith.addf %284, %286 : vector<8x32xf32>
    %288 = vector.extract_strided_slice %278 {offsets = [0, 32], sizes = [8, 32], strides = [1, 1]} : vector<8x96xf32> to vector<8x32xf32>
    %289 = arith.mulf %288, %250 : vector<8x32xf32>
    %290 = vector.extract_strided_slice %278 {offsets = [0, 0], sizes = [8, 32], strides = [1, 1]} : vector<8x96xf32> to vector<8x32xf32>
    %291 = arith.mulf %290, %282 : vector<8x32xf32>
    %292 = arith.addf %289, %291 : vector<8x32xf32>
    %293 = vector.extract_strided_slice %272 {offsets = [0, 64], sizes = [8, 32], strides = [1, 1]} : vector<8x96xf32> to vector<8x32xf32>
    %294 = math.tanh %287 : vector<8x32xf32>
    %295 = arith.mulf %293, %294 : vector<8x32xf32>
    %296 = vector.extract_strided_slice %278 {offsets = [0, 64], sizes = [8, 32], strides = [1, 1]} : vector<8x96xf32> to vector<8x32xf32>
    %297 = math.tanh %292 : vector<8x32xf32>
    %298 = arith.mulf %296, %297 : vector<8x32xf32>
    %c48_75 = arith.constant 48 : index
    %c0_76 = arith.constant 0 : index
    %299 = vector.load %arg7[%c48_75, %c0_76] : memref<64x64xf32, #tpu.memory_space<vmem>>, vector<8x32xf32>
    tpu.vector_store %arg7[%c48_75, %c0_76], %295 {strides = array<i32>} : memref<64x64xf32, #tpu.memory_space<vmem>>, vector<8x32xf32>,
    %c8_77 = arith.constant 8 : index
    %c32_78 = arith.constant 32 : index
    %300 = vector.load %arg7[%c8_77, %c32_78] : memref<64x64xf32, #tpu.memory_space<vmem>>, vector<8x32xf32>
    tpu.vector_store %arg7[%c8_77, %c32_78], %298 {strides = array<i32>} : memref<64x64xf32, #tpu.memory_space<vmem>>, vector<8x32xf32>,
    %301 = tpu.concatenate %295, %298 in 1 : vector<8x32xf32>, vector<8x32xf32> -> vector<8x64xf32>
    %cst_79 = arith.constant dense<0.000000e+00> : vector<8x256xf32>
    %302 = tpu.matmul %301, %4, %cst_79 {dimension_numbers = #tpu.dot_dimension_numbers<[1], [0], [0], [1], [0, 0, 1, 1], [], []>} : vector<8x64xf32>, vector<64x256xf32>, vector<8x256xf32> -> vector<8x256xf32>
    %c56_80 = arith.constant 56 : index
    %c0_81 = arith.constant 0 : index
    %303 = vector.load %arg6[%c56_80, %c0_81] : memref<64x256xf32, #tpu.memory_space<vmem>>, vector<8x128xf32>
    %c0_82 = arith.constant 0 : index
    %c128_83 = arith.constant 128 : index
    %304 = vector.load %arg6[%c0_82, %c128_83] : memref<64x256xf32, #tpu.memory_space<vmem>>, vector<8x128xf32>
    %305 = tpu.concatenate %303, %304 in 1 : vector<8x128xf32>, vector<8x128xf32> -> vector<8x256xf32>
    %306 = arith.addf %302, %305 : vector<8x256xf32>
    %307 = vector.extract_strided_slice %306 {offsets = [0, 0], sizes = [8, 128], strides = [1, 1]} : vector<8x256xf32> to vector<8x128xf32>
    %308 = vector.extract_strided_slice %306 {offsets = [0, 128], sizes = [8, 128], strides = [1, 1]} : vector<8x256xf32> to vector<8x128xf32>
    %309 = vector.extract_strided_slice %307 {offsets = [0, 0], sizes = [8, 96], strides = [1, 1]} : vector<8x128xf32> to vector<8x96xf32>
    %310 = arith.negf %309 : vector<8x96xf32>
    %311 = math.exp %310 : vector<8x96xf32>
    %cst_84 = arith.constant 1.000000e+00 : f32
    %312 = vector.broadcast %cst_84 : f32 to vector<8x96xf32>
    %313 = arith.addf %312, %311 : vector<8x96xf32>
    %314 = arith.divf %312, %313 : vector<8x96xf32>
    %315 = vector.extract_strided_slice %308 {offsets = [0, 0], sizes = [8, 96], strides = [1, 1]} : vector<8x128xf32> to vector<8x96xf32>
    %316 = arith.negf %315 : vector<8x96xf32>
    %317 = math.exp %316 : vector<8x96xf32>
    %cst_85 = arith.constant 1.000000e+00 : f32
    %318 = vector.broadcast %cst_85 : f32 to vector<8x96xf32>
    %319 = arith.addf %318, %317 : vector<8x96xf32>
    %320 = arith.divf %318, %319 : vector<8x96xf32>
    %321 = vector.extract_strided_slice %307 {offsets = [0, 96], sizes = [8, 32], strides = [1, 1]} : vector<8x128xf32> to vector<8x32xf32>
    %322 = math.tanh %321 : vector<8x32xf32>
    %323 = vector.extract_strided_slice %308 {offsets = [0, 96], sizes = [8, 32], strides = [1, 1]} : vector<8x128xf32> to vector<8x32xf32>
    %324 = math.tanh %323 : vector<8x32xf32>
    %325 = vector.extract_strided_slice %314 {offsets = [0, 32], sizes = [8, 32], strides = [1, 1]} : vector<8x96xf32> to vector<8x32xf32>
    %326 = arith.mulf %325, %287 : vector<8x32xf32>
    %327 = vector.extract_strided_slice %314 {offsets = [0, 0], sizes = [8, 32], strides = [1, 1]} : vector<8x96xf32> to vector<8x32xf32>
    %328 = arith.mulf %327, %322 : vector<8x32xf32>
    %329 = arith.addf %326, %328 : vector<8x32xf32>
    %330 = vector.extract_strided_slice %320 {offsets = [0, 32], sizes = [8, 32], strides = [1, 1]} : vector<8x96xf32> to vector<8x32xf32>
    %331 = arith.mulf %330, %292 : vector<8x32xf32>
    %332 = vector.extract_strided_slice %320 {offsets = [0, 0], sizes = [8, 32], strides = [1, 1]} : vector<8x96xf32> to vector<8x32xf32>
    %333 = arith.mulf %332, %324 : vector<8x32xf32>
    %334 = arith.addf %331, %333 : vector<8x32xf32>
    %335 = vector.extract_strided_slice %314 {offsets = [0, 64], sizes = [8, 32], strides = [1, 1]} : vector<8x96xf32> to vector<8x32xf32>
    %336 = math.tanh %329 : vector<8x32xf32>
    %337 = arith.mulf %335, %336 : vector<8x32xf32>
    %338 = vector.extract_strided_slice %320 {offsets = [0, 64], sizes = [8, 32], strides = [1, 1]} : vector<8x96xf32> to vector<8x32xf32>
    %339 = math.tanh %334 : vector<8x32xf32>
    %340 = arith.mulf %338, %339 : vector<8x32xf32>
    %c56_86 = arith.constant 56 : index
    %c0_87 = arith.constant 0 : index
    %341 = vector.load %arg7[%c56_86, %c0_87] : memref<64x64xf32, #tpu.memory_space<vmem>>, vector<8x32xf32>
    tpu.vector_store %arg7[%c56_86, %c0_87], %337 {strides = array<i32>} : memref<64x64xf32, #tpu.memory_space<vmem>>, vector<8x32xf32>,
    %c0_88 = arith.constant 0 : index
    %c32_89 = arith.constant 32 : index
    %342 = vector.load %arg7[%c0_88, %c32_89] : memref<64x64xf32, #tpu.memory_space<vmem>>, vector<8x32xf32>
    tpu.vector_store %arg7[%c0_88, %c32_89], %340 {strides = array<i32>} : memref<64x64xf32, #tpu.memory_space<vmem>>, vector<8x32xf32>,
    %c0_90 = arith.constant 0 : index
    %c0_91 = arith.constant 0 : index
    %343 = vector.load %arg7[%c0_90, %c0_91] : memref<64x64xf32, #tpu.memory_space<vmem>>, vector<64x64xf32>
    %c0_92 = arith.constant 0 : index
    %c0_93 = arith.constant 0 : index
    %344 = vector.load %arg3[%c0_92, %c0_93] : memref<64x128xf32, #tpu.memory_space<vmem>>, vector<64x128xf32>
    %cst_94 = arith.constant dense<0.000000e+00> : vector<64x128xf32>
    %345 = tpu.matmul %343, %344, %cst_94 {dimension_numbers = #tpu.dot_dimension_numbers<[1], [0], [0], [1], [0, 0, 1, 1], [], []>} : vector<64x64xf32>, vector<64x128xf32>, vector<64x128xf32> -> vector<64x128xf32>
    %c0_95 = arith.constant 0 : index
    %c0_96 = arith.constant 0 : index
    %346 = vector.load %arg4[%c0_95, %c0_96] : memref<1x128xf32, #tpu.memory_space<vmem>>, vector<1x128xf32>
    %347 = vector.broadcast %346 : vector<1x128xf32> to vector<64x128xf32>
    %348 = arith.addf %345, %347 : vector<64x128xf32>
    %c0_97 = arith.constant 0 : index
    %c0_98 = arith.constant 0 : index
    %349 = vector.load %arg5[%c0_97, %c0_98] : memref<64x128xf32, #tpu.memory_space<vmem>>, vector<64x128xf32>
    tpu.vector_store %arg5[%c0_97, %c0_98], %348 {strides = array<i32>} : memref<64x128xf32, #tpu.memory_space<vmem>>, vector<64x128xf32>,
    return
  }
}

</mosaic_0001>

<bundles_post_ra>
// kernel: bilstm_forward.1
= control target key start
LH: loop header
LB: loop body
LE: loop exit
PB: predicated region body
PF: predicated region fallthrough
CT: control target
= control target key end

     0   :  { %vm32_vm0 = vcmask 130048   ;;  %v1501_v18 = vmov 0.0   ;;  %s1503_s21 = smov 64   ;;  %s1504_s22 = smov 96   ;;  %vm295_vm9 = vcmask 261120   ;;  %vm301_vm10 = vcmask 523520   ;;  %s2069_s1 = inlined_call_operand.vmem [shape: f32[16,256], index: 1, kind: input, shape index: {}]   ;;  %s2070_s0 = inlined_call_operand.vmem [shape: f32[64,16], index: 0, kind: input, shape index: {}]   ;;  %s2071_s2 = inlined_call_operand.vmem [shape: f32[64,256], index: 2, kind: input, shape index: {}]   ;;  %s2072_s3 = inlined_call_operand.vmem [shape: f32[64,128], index: 3, kind: input, shape index: {}]   ;;  %s2073_s4 = inlined_call_operand.vmem [shape: f32[1,128], index: 4, kind: input, shape index: {}]   ;;  %s2074_s5 = inlined_call_operand.vmem [shape: f32[64,128], index: 5, kind: output, shape index: {}]  }
   0x1   :  { %v30_v0 = vld [vmem:[%s2069_s1 + $0x10] sm:$0xff]  ;;  %v28_v1 = vld [vmem:[%s2069_s1] sm:$0xff]  ;;  %v1547_v3 = vld [vmem:[%s2070_s0 + $0x18] sm:$0xff]  ;;  %vm173_vm11 = vcmask 523264  }
   0x2   :  { %71 = vmatpush.msra.mxu1 %v30_v0  ;;  %1364 = vmatpush.msra.mxu2 %v30_v0  ;;  %v20_v2 = vld [vmem:[%s2070_s0] sm:$0xff]  ;;  %v31_v4 = vld [vmem:[%s2069_s1 + $0x18] sm:$0xff]  ;;  %v1555_v5 = vld [vmem:[%s2071_s2 + $0x70] sm:$0xff] }
   0x3   :  { %1365 = vmatpush.msra.mxu3 %v30_v0  ;;  %v1563_v6 = vld [vmem:[%s2071_s2 + $0x60] sm:$0xff]  ;;  %v29_v7 = vld [vmem:[%s2069_s1 + $0x8] sm:$0xff]  ;;  %v1572_v8 = vld [vmem:[%s2071_s2 + $0x50] sm:$0xff]  ;;  %707 = vmatpush.msra.mxu0 %v1555_v5 }
   0x4   :  { %72 = vmatpush.msra.mxu1 %v28_v1  ;;  %1366 = vmatpush.msra.mxu2 %v28_v1  ;;  %v1579_v9 = vld [vmem:[%s2071_s2 + $0x40] sm:$0xff]  ;;  %v21_v10 = vld [vmem:[%s2070_s0 + $0x8] sm:$0xff]  ;;  %v1594_v12 = vld [vmem:[%s2071_s2 + $0x30] sm:$0xff] }
   0x5   :  { %1310 = vmatmul.msk.f32.vlgmr.msra.gmra.mxu1 %vm32_vm0, %v20_v2  ;;  %1313 = vmatmul.msk.f32.vlgmr.msra.gmra.mxu2 %vm32_vm0, %v1547_v3  ;;  %v1588_v11 = vld [vmem:[%s2070_s0 + $0x20] sm:$0xff]  ;;  %v1611_v14 = vld [vmem:[%s2071_s2 + $0x10] sm:$0xff]  ;;  %v1626_v17 = vld [vmem:[%s2070_s0 + $0x28] sm:$0xff] }
   0x6   :  { %112 = vmatpush.msrb.mxu1 %v31_v4  ;;  %185 = vmatpush.msrb.mxu2 %v1555_v5  ;;  %v1604_v13 = vld [vmem:[%s2071_s2 + $0x20] sm:$0xff]  ;;  %v22_v16 = vld [vmem:[%s2070_s0 + $0x10] sm:$0xff]  ;;  %v1652_v20 = vld [vmem:[%s2071_s2 + $0x78] sm:$0xff] }
   0x7   :  { %1367 = vmatpush.msra.mxu3 %v28_v1  ;;  %708 = vmatpush.msra.mxu0 %v1563_v6  ;;  %v1618_v15 = vld [vmem:[%s2071_s2] sm:$0xff]  ;;  %v1647_v19 = vld [vmem:[%s2070_s0 + $0x30] sm:$0xff]  ;;  %v1659_v21 = vld [vmem:[%s2071_s2 + $0x68] sm:$0xff] }
   0x8   :  { %186 = vmatpush.msrb.mxu2 %v1563_v6  ;;  %113 = vmatpush.msrb.mxu1 %v29_v7  ;;  %v1667_v22 = vld [vmem:[%s2071_s2 + $0x58] sm:$0xff]  ;;  %v1683_v23 = vld [vmem:[%s2071_s2 + $0x48] sm:$0xff] }
   0x9   :  { %709 = vmatpush.msra.mxu0 %v1572_v8  ;;  %1316 = vmatmul.msk.f32.vlgmr.msra.gmra.mxu3 %vm32_vm0, %v1647_v19  ;;  %v27_v24 = vld [vmem:[%s2070_s0 + $0x38] sm:$0xff]  ;;  %v1700_v26 = vld [vmem:[%s2071_s2 + $0x28] sm:$0xff] }
   0xa   :  { %187 = vmatpush.msrb.mxu2 %v1572_v8  ;;  %205 = vmatpush.msrb.mxu3 %v1652_v20  ;;  %v1691_v25 = vld [vmem:[%s2071_s2 + $0x38] sm:$0xff]  ;;  %v1722_v28 = vld [vmem:[%s2071_s2 + $0x8] sm:$0xff] }
   0xb   :  { %710 = vmatpush.msra.mxu0 %v1579_v9  ;;  %727 = vmatpush.msra.mxu1 %v1652_v20  ;;  %v1708_v27 = vld [vmem:[%s2071_s2 + $0x18] sm:$0xff]  ;;  %s1502_s2 = smov 32  }
   0xc   :  { %188 = vmatpush.msrb.mxu2 %v1579_v9  ;;  %206 = vmatpush.msrb.mxu3 %v1659_v21 }
   0xd   :  { %1311 = vmatmul.msk.f32.gmra.mxu1 %vm32_vm0, %v21_v10  ;;  %1314 = vmatmul.msk.f32.gmra.mxu2 %vm32_vm0, %v1588_v11 }
   0xe   :  { %189 = vmatpush.msrb.mxu2 %v1594_v12  ;;  %711 = vmatpush.msra.mxu0 %v1594_v12 }
   0xf   :  { %728 = vmatpush.msra.mxu1 %v1659_v21  ;;  %207 = vmatpush.msrb.mxu3 %v1667_v22 }
  0x10   :  { %190 = vmatpush.msrb.mxu2 %v1604_v13  ;;  %712 = vmatpush.msra.mxu0 %v1604_v13 }
  0x11   :  { %729 = vmatpush.msra.mxu1 %v1667_v22  ;;  %208 = vmatpush.msrb.mxu3 %v1683_v23 }
  0x12   :  { %191 = vmatpush.msrb.mxu2 %v1611_v14  ;;  %713 = vmatpush.msra.mxu0 %v1611_v14 }
  0x13   :  { %730 = vmatpush.msra.mxu1 %v1683_v23  ;;  %1317 = vmatmul.msk.f32.gmra.mxu3 %vm32_vm0, %v27_v24 }
  0x14   :  { %192 = vmatpush.msrb.mxu2 %v1618_v15  ;;  %714 = vmatpush.msra.mxu0 %v1618_v15 }
  0x15   :  { %1312 = vmatmul.msk.f32.gmra.mxu1 %vm32_vm0, %v22_v16  ;;  %1315 = vmatmul.msk.f32.gmra.mxu2 %vm32_vm0, %v1626_v17 }
  0x16   :  { %317 = vmatpush.msra.mxu2 %v1555_v5  ;;  %967 = vmatpush.msrb.mxu0 %v1555_v5 }
  0x17   :  { %209 = vmatpush.msrb.mxu3 %v1691_v25  ;;  %731 = vmatpush.msra.mxu1 %v1691_v25 }
  0x18   :  { %318 = vmatpush.msra.mxu2 %v1563_v6  ;;  %968 = vmatpush.msrb.mxu0 %v1563_v6 }
  0x19   :  { %210 = vmatpush.msrb.mxu3 %v1700_v26  ;;  %732 = vmatpush.msra.mxu1 %v1700_v26 }
  0x1a   :  { %319 = vmatpush.msra.mxu2 %v1572_v8  ;;  %969 = vmatpush.msrb.mxu0 %v1572_v8 }
  0x1b   :  { %211 = vmatpush.msrb.mxu3 %v1708_v27  ;;  %733 = vmatpush.msra.mxu1 %v1708_v27 }
  0x1c   :  { %320 = vmatpush.msra.mxu2 %v1579_v9  ;;  %970 = vmatpush.msrb.mxu0 %v1579_v9 }
  0x1d   :  { %1318 = vmatmul.msk.f32.vlgmr.msrb.gmra.mxu1 %vm32_vm0, %v20_v2  ;;  %193 = vmatmul.f32.vlgmr.msrb.gmra.mxu2 %v1501_v18 }
  0x1e   :  { %321 = vmatpush.msra.mxu2 %v1594_v12  ;;  %971 = vmatpush.msrb.mxu0 %v1594_v12 }
  0x1f   :  { %212 = vmatpush.msrb.mxu3 %v1722_v28  ;;  %734 = vmatpush.msra.mxu1 %v1722_v28 }
  0x20   :  { %322 = vmatpush.msra.mxu2 %v1604_v13  ;;  %972 = vmatpush.msrb.mxu0 %v1604_v13 }
  0x21   :  { %213 = vmatmul.f32.vlgmr.msrb.gmra.mxu3 %v1501_v18  ;;  %987 = vmatpush.msrb.mxu1 %v1652_v20 }
  0x22   :  { %323 = vmatpush.msra.mxu2 %v1611_v14  ;;  %973 = vmatpush.msrb.mxu0 %v1611_v14 }
  0x23   :  { %337 = vmatpush.msra.mxu3 %v1652_v20  ;;  %988 = vmatpush.msrb.mxu1 %v1659_v21 }
  0x24   :  { %324 = vmatpush.msra.mxu2 %v1618_v15  ;;  %974 = vmatpush.msrb.mxu0 %v1618_v15 }
  0x25   :  { %1319 = vmatmul.msk.f32.gmra.mxu1 %vm32_vm0, %v21_v10  ;;  %338 = vmatpush.msra.mxu3 %v1659_v21 }
  0x26   :  { %447 = vmatpush.msrb.mxu2 %v1555_v5  ;;  %989 = vmatpush.msrb.mxu1 %v1667_v22 }
  0x27   :  { %339 = vmatpush.msra.mxu3 %v1667_v22 }
  0x28   :  { %448 = vmatpush.msrb.mxu2 %v1563_v6  ;;  %990 = vmatpush.msrb.mxu1 %v1683_v23 }
  0x29   :  { %340 = vmatpush.msra.mxu3 %v1683_v23 }
  0x2a   :  { %449 = vmatpush.msrb.mxu2 %v1572_v8  ;;  %991 = vmatpush.msrb.mxu1 %v1691_v25 }
  0x2b   :  { %341 = vmatpush.msra.mxu3 %v1691_v25 }
  0x2c   :  { %450 = vmatpush.msrb.mxu2 %v1579_v9  ;;  %992 = vmatpush.msrb.mxu1 %v1700_v26 }
  0x2d   :  { %1320 = vmatmul.msk.f32.gmra.mxu1 %vm32_vm0, %v22_v16  ;;  %342 = vmatpush.msra.mxu3 %v1700_v26 }
  0x2e   :  { %451 = vmatpush.msrb.mxu2 %v1594_v12  ;;  %993 = vmatpush.msrb.mxu1 %v1708_v27 }
  0x2f   :  { %343 = vmatpush.msra.mxu3 %v1708_v27 }
  0x30   :  { %452 = vmatpush.msrb.mxu2 %v1604_v13  ;;  %994 = vmatpush.msrb.mxu1 %v1722_v28 }
  0x31   :  { %344 = vmatpush.msra.mxu3 %v1722_v28 }
  0x32   :  { %453 = vmatpush.msrb.mxu2 %v1611_v14 }
  0x33   :  { %467 = vmatpush.msrb.mxu3 %v1652_v20 }
  0x34   :  { %454 = vmatpush.msrb.mxu2 %v1618_v15 }
  0x35   :  { %1321 = vmatmul.msk.f32.gmra.mxu1 %vm32_vm0, %v1547_v3  ;;  %468 = vmatpush.msrb.mxu3 %v1659_v21 }
  0x37   :  { %469 = vmatpush.msrb.mxu3 %v1667_v22 }
  0x39   :  { %470 = vmatpush.msrb.mxu3 %v1683_v23 }
  0x3b   :  { %471 = vmatpush.msrb.mxu3 %v1691_v25 }
  0x3d   :  { %1322 = vmatmul.msk.f32.gmra.mxu1 %vm32_vm0, %v1588_v11  ;;  %472 = vmatpush.msrb.mxu3 %v1700_v26 }
  0x3f   :  { %473 = vmatpush.msrb.mxu3 %v1708_v27 }
  0x41   :  { %474 = vmatpush.msrb.mxu3 %v1722_v28 }
  0x45   :  { %1323 = vmatmul.msk.f32.gmra.mxu1 %vm32_vm0, %v1626_v17 }
  0x4d   :  { %1324 = vmatmul.msk.f32.gmra.mxu1 %vm32_vm0, %v1647_v19 }
  0x55   :  { %1325 = vmatmul.msk.f32.gmra.mxu1 %vm32_vm0, %v27_v24 }
  0x82   :  { %v74_v29 = vpop.f32.mrf.mxu1 }
  0x88   :  { %v1763_v30 = vpop.f32.mrf.mxu2 }
  0x8a   :  { %v1765_v31 = vpop.f32.mrf.mxu1 }
  0x8c   :  { %v1784_v43 = vpop.f32.mrf.mxu3 }
  0x90   :  { %v1767_v32 = vpop.f32.mrf.mxu2 }
  0x92   :  { %v1769_v33 = vpop.f32.mrf.mxu1 }
  0x96   :  { %v1788_v45 = vpop.f32.mrf.mxu3 }
  0x98   :  { %v1771_v34 = vpop.f32.mrf.mxu2 }
  0x9a   :  { %v1773_v35 = vpop.f32.mrf.mxu1 }
  0xa0   :  { %v194_v36 = vpop.f32.mrf.mxu2 }
  0xa1   :  { %v195_v37 = vadd.f32 %v194_v36, %v74_v29 }
  0xa2   :  { %v1775_v38 = vpop.f32.mrf.mxu1 }
  0xa3   :  { %1373 = vtanh.f32 %v195_v37  ;;  %v1326_v51 = vmul.f32 -1.442695, %v195_v37 }
  0xa4   :  { %v214_v47 = vpop.f32.mrf.mxu3 }
  0xa9   :  { %v1374_v39 = vpop.eup %1373 }
  0xaa   :  { %259 = vrot.lane.b32.xlu0 %v1374_v39, %s1502_s2  ;;  %v1778_v40 = vpop.f32.mrf.mxu1 }
  0xb2   :  { %v1780_v41 = vpop.f32.mrf.mxu1 }
  0xba   :  { %v1782_v42 = vpop.f32.mrf.mxu1 }
  0xc2   :  { %v1786_v44 = vpop.f32.mrf.mxu1 }
  0xca   :  { %v1790_v46 = vpop.f32.mrf.mxu1 }
  0xd2   :  { %v136_v48 = vpop.f32.mrf.mxu1 }
  0xd3   :  { %v215_v49 = vadd.f32 %v214_v47, %v136_v48 }
  0xd5   :  { %1375 = vtanh.f32 %v215_v49  ;;  %v1327_v2 = vmul.f32 -1.442695, %v215_v49 }
  0xd6   :  { %1377 = vpow2.f32 %v1326_v51 }
  0xdb   :  { %v1376_v50 = vpop.eup %1375 }
  0xdc   :  { %270 = vrot.lane.b32.xlu0 %v1376_v50, %s1502_s2  ;;  %v1378_v52 = vpop.eup %1377 }
  0xdd   :  { %v220_v53 = vadd.f32 1.0, %v1378_v52 }
  0xdf   :  { %1379 = vrcp.f32 %v220_v53  ;;  %v232_v59 = vand.u32 2147483648, %v220_v53  ;;  %vm226_vm2 = vweird.f32 %v220_v53  ;;  %v230_v60 = vand.u32 2147483647, %v220_v53 }
  0xe0   :  { %1381 = vpow2.f32 %v1327_v2 }
  0xe1   :  { %v233_v62 = vor.u32 1.1754944e-38, %v232_v59  ;;  %vm231_vm4 = vcmp.eq.f32.partialorder %v230_v60, 8.507059e+37 }
  0xe5   :  { %v1380_v54 = vpop.eup %1379 }
  0xe6   :  { %v222_v55 = vmul.f32 %v1380_v54, %v220_v53  ;;  %vm227_vm1 = vweird.f32 %v1380_v54  ;;  %v1382_v3 = vpop.eup %1381 }
  0xe7   :  { %vm228_vm3 = vmor %vm226_vm2, %vm227_vm1  ;;  %v239_v4 = vadd.f32 1.0, %v1382_v3 }
  0xe8   :  { %v223_v56 = vsub.f32 1.0, %v222_v55 }
  0xe9   :  { %1383 = vrcp.f32 %v239_v4  ;;  %v251_v18 = vand.u32 2147483648, %v239_v4  ;;  %vm245_vm6 = vweird.f32 %v239_v4  ;;  %v249_v19 = vand.u32 2147483647, %v239_v4 }
  0xea   :  { %v224_v57 = vmul.f32 %v1380_v54, %v223_v56 }
  0xeb   :  { %v252_v29 = vor.u32 1.1754944e-38, %v251_v18  ;;  %vm250_vm8 = vcmp.eq.f32.partialorder %v249_v19, 8.507059e+37 }
  0xec   :  { %v225_v58 = vadd.f32 %v1380_v54, %v224_v57 }
  0xee   :  { %v229_v61 = vsel %vm228_vm3, %v1380_v54, %v225_v58 }
  0xef   :  { %v234_v0 = vsel %vm231_vm4, %v233_v62, %v229_v61  ;;  %v1384_v7 = vpop.eup %1383 }
  0xf0   :  { %v241_v10 = vmul.f32 %v1384_v7, %v239_v4  ;;  %vm246_vm5 = vweird.f32 %v1384_v7  ;;  %v257_v47 = vmul.f32 0.0, %v234_v0 }
  0xf1   :  { %vm247_vm7 = vmor %vm245_vm6, %vm246_vm5 }
  0xf2   :  { %v242_v11 = vsub.f32 1.0, %v241_v10 }
  0xf4   :  { %v243_v16 = vmul.f32 %v1384_v7, %v242_v11 }
  0xf6   :  { %v244_v17 = vadd.f32 %v1384_v7, %v243_v16 }
  0xf8   :  { %v248_v24 = vsel %vm247_vm7, %v1384_v7, %v244_v17 }
  0xf9   :  { %v253_v37 = vsel %vm250_vm8, %v252_v29, %v248_v24 }
  0xfa   :  { %v268_v51 = vmul.f32 0.0, %v253_v37 }
 0x11c   :  { %v260_v63 = vpop.permute.xlu0 %259 }
 0x11d   :  { %v262_v1 = vmul.f32 %v260_v63, %v234_v0 }
 0x11f   :  { %264 = vrot.lane.b32.xlu1 %v262_v1, %s1502_s2 }
 0x14e   :  { %v271_v36 = vpop.permute.xlu0 %270 }
 0x14f   :  { %v273_v39 = vmul.f32 %v271_v36, %v253_v37 }
 0x151   :  { %275 = vrot.lane.b32.xlu1 %v273_v39, %s1502_s2 }
 0x191   :  { %v265_v48 = vpop.permute.xlu1 %264 }
 0x192   :  { %v1795_v49 = vadd.f32 %v265_v48, %v257_v47 }
 0x194   :  { %1385 = vtanh.f32 %v1795_v49 }
 0x19a   :  { %v1386_v50 = vpop.eup %1385 }
 0x19b   :  { %281 = vrot.lane.b32.xlu2 %v1386_v50, %s1502_s2 }
 0x1c3   :  { %v276_v52 = vpop.permute.xlu1 %275 }
 0x1c4   :  { %v1799_v53 = vadd.f32 %v276_v52, %v268_v51 }
 0x1c6   :  { %1387 = vtanh.f32 %v1799_v53 }
 0x1cc   :  { %v1388_v54 = vpop.eup %1387 }
 0x1cd   :  { %287 = vrot.lane.b32.xlu2 %v1388_v54, %s1502_s2 }
 0x1f5   :  { %v282_v55 = vpop.permute.xlu2 %281 }
 0x1f6   :  { %v284_v56 = vmul.f32 %v282_v55, %v234_v0 }
 0x1f8   :  { %292 = vrot.lane.b32.xlu0 %v284_v56, %s1503_s21 }
 0x227   :  { %v288_v57 = vpop.permute.xlu2 %287 }
 0x228   :  { %v290_v58 = vmul.f32 %v288_v57, %v253_v37 }
 0x22a   :  { %298 = vrot.lane.b32.xlu1 %v290_v58, %s1504_s22 }
 0x26a   :  { %v293_v59 = vpop.permute.xlu0 %292 }
 0x26b   :  { %296 = vst.msk [vmem:[#allocation3] sm:$0xff] %vm295_vm9, %v293_v59 }
 0x29c   :  { %v299_v60 = vpop.permute.xlu1 %298 }
 0x29d   :  { %302 = vst.msk [vmem:[#allocation3 + $0x38] sm:$0xff] %vm301_vm10, %v299_v60  ;;  %v303_v61 = vsel %vm295_vm9, %v293_v59, %v299_v60 }
 0x29e   :  { %1328 = vmatmul.msk.f32.vlgmr.msra.gmra.mxu2 %vm173_vm11, %v303_v61  ;;  %1329 = vmatmul.msk.f32.vlgmr.msra.gmra.mxu3 %vm173_vm11, %v303_v61 }
 0x29f   :  { %577 = vmatpush.msra.mxu2 %v1555_v5  ;;  %597 = vmatpush.msra.mxu3 %v1652_v20 }
 0x2a1   :  { %578 = vmatpush.msra.mxu2 %v1563_v6  ;;  %598 = vmatpush.msra.mxu3 %v1659_v21 }
 0x2a3   :  { %579 = vmatpush.msra.mxu2 %v1572_v8  ;;  %599 = vmatpush.msra.mxu3 %v1667_v22 }
 0x2a5   :  { %580 = vmatpush.msra.mxu2 %v1579_v9  ;;  %600 = vmatpush.msra.mxu3 %v1683_v23 }
 0x2a7   :  { %581 = vmatpush.msra.mxu2 %v1594_v12  ;;  %601 = vmatpush.msra.mxu3 %v1691_v25 }
 0x2a9   :  { %582 = vmatpush.msra.mxu2 %v1604_v13  ;;  %602 = vmatpush.msra.mxu3 %v1700_v26 }
 0x2ab   :  { %583 = vmatpush.msra.mxu2 %v1611_v14  ;;  %603 = vmatpush.msra.mxu3 %v1708_v27 }
 0x2ad   :  { %584 = vmatpush.msra.mxu2 %v1618_v15  ;;  %604 = vmatpush.msra.mxu3 %v1722_v28 }
 0x321   :  { %v326_v62 = vpop.f32.mrf.mxu2  ;;  %v346_v63 = vpop.f32.mrf.mxu3 }
 0x322   :  { %v327_v0 = vadd.f32 %v326_v62, %v1765_v31  ;;  %v347_v1 = vadd.f32 %v346_v63, %v1790_v46 }
 0x324   :  { %1389 = vtanh.f32 %v327_v0  ;;  %v1330_v4 = vmul.f32 -1.442695, %v327_v0  ;;  %v1331_v16 = vmul.f32 -1.442695, %v347_v1 }
 0x325   :  { %1391 = vtanh.f32 %v347_v1 }
 0x326   :  { %1393 = vpow2.f32 %v1330_v4 }
 0x32a   :  { %v1390_v2 = vpop.eup %1389 }
 0x32b   :  { %v1392_v3 = vpop.eup %1391  ;;  %391 = vrot.lane.b32.xlu2 %v1390_v2, %s1502_s2 }
 0x32c   :  { %402 = vrot.lane.b32.xlu0 %v1392_v3, %s1502_s2  ;;  %v1394_v7 = vpop.eup %1393 }
 0x32d   :  { %v352_v10 = vadd.f32 1.0, %v1394_v7 }
 0x32f   :  { %1395 = vrcp.f32 %v352_v10  ;;  %v364_v29 = vand.u32 2147483648, %v352_v10  ;;  %vm358_vm13 = vweird.f32 %v352_v10  ;;  %v362_v36 = vand.u32 2147483647, %v352_v10 }
 0x330   :  { %1397 = vpow2.f32 %v1331_v16 }
 0x331   :  { %v365_v39 = vor.u32 1.1754944e-38, %v364_v29  ;;  %vm363_vm15 = vcmp.eq.f32.partialorder %v362_v36, 8.507059e+37 }
 0x335   :  { %v1396_v11 = vpop.eup %1395 }
 0x336   :  { %v354_v17 = vmul.f32 %v1396_v11, %v352_v10  ;;  %v1398_v46 = vpop.eup %1397  ;;  %vm359_vm12 = vweird.f32 %v1396_v11 }
 0x337   :  { %v371_v19 = vadd.f32 1.0, %v1398_v46  ;;  %vm360_vm14 = vmor %vm358_vm13, %vm359_vm12 }
 0x338   :  { %v355_v31 = vsub.f32 1.0, %v354_v17 }
 0x339   :  { %1399 = vrcp.f32 %v371_v19  ;;  %v383_v57 = vand.u32 2147483648, %v371_v19  ;;  %vm377_vm1 = vweird.f32 %v371_v19  ;;  %v381_v58 = vand.u32 2147483647, %v371_v19 }
 0x33a   :  { %v356_v18 = vmul.f32 %v1396_v11, %v355_v31 }
 0x33b   :  { %v384_v60 = vor.u32 1.1754944e-38, %v383_v57  ;;  %vm382_vm3 = vcmp.eq.f32.partialorder %v381_v58, 8.507059e+37 }
 0x33c   :  { %v357_v24 = vadd.f32 %v1396_v11, %v356_v18 }
 0x33e   :  { %v361_v37 = vsel %vm360_vm14, %v1396_v11, %v357_v24 }
 0x33f   :  { %v366_v48 = vsel %vm363_vm15, %v365_v39, %v361_v37  ;;  %v1400_v51 = vpop.eup %1399 }
 0x340   :  { %v373_v52 = vmul.f32 %v1400_v51, %v371_v19  ;;  %vm378_vm0 = vweird.f32 %v1400_v51  ;;  %v389_v0 = vmul.f32 %v366_v48, %v1795_v49 }
 0x341   :  { %vm379_vm2 = vmor %vm377_vm1, %vm378_vm0 }
 0x342   :  { %v374_v54 = vsub.f32 1.0, %v373_v52 }
 0x344   :  { %v375_v55 = vmul.f32 %v1400_v51, %v374_v54 }
 0x346   :  { %v376_v56 = vadd.f32 %v1400_v51, %v375_v55 }
 0x348   :  { %v380_v59 = vsel %vm379_vm2, %v1400_v51, %v376_v56 }
 0x349   :  { %v385_v62 = vsel %vm382_vm3, %v384_v60, %v380_v59 }
 0x34a   :  { %v400_v1 = vmul.f32 %v385_v62, %v1799_v53 }
 0x385   :  { %v392_v47 = vpop.permute.xlu2 %391 }
 0x386   :  { %v394_v50 = vmul.f32 %v392_v47, %v366_v48 }
 0x388   :  { %396 = vrot.lane.b32.xlu1 %v394_v50, %s1502_s2 }
 0x39e   :  { %v403_v61 = vpop.permute.xlu0 %402 }
 0x39f   :  { %v405_v63 = vmul.f32 %v403_v61, %v385_v62 }
 0x3a1   :  { %407 = vrot.lane.b32.xlu2 %v405_v63, %s1502_s2 }
 0x3fa   :  { %v397_v2 = vpop.permute.xlu1 %396 }
 0x3fb   :  { %v408_v3 = vpop.permute.xlu2 %407  ;;  %v1834_v4 = vadd.f32 %v397_v2, %v389_v0 }
 0x3fc   :  { %v1836_v7 = vadd.f32 %v408_v3, %v400_v1 }
 0x3fd   :  { %1401 = vtanh.f32 %v1834_v4 }
 0x3fe   :  { %1403 = vtanh.f32 %v1836_v7 }
 0x403   :  { %v1402_v10 = vpop.eup %1401 }
 0x404   :  { %v1404_v11 = vpop.eup %1403  ;;  %413 = vrot.lane.b32.xlu0 %v1402_v10, %s1502_s2 }
 0x405   :  { %419 = vrot.lane.b32.xlu1 %v1404_v11, %s1502_s2 }
 0x476   :  { %v414_v16 = vpop.permute.xlu0 %413 }
 0x477   :  { %v420_v49 = vpop.permute.xlu1 %419  ;;  %v416_v17 = vmul.f32 %v414_v16, %v366_v48 }
 0x478   :  { %v422_v53 = vmul.f32 %v420_v49, %v385_v62 }
 0x479   :  { %424 = vrot.lane.b32.xlu2 %v416_v17, %s1503_s21 }
 0x47a   :  { %429 = vrot.lane.b32.xlu0 %v422_v53, %s1504_s22 }
 0x4d3   :  { %v425_v31 = vpop.permute.xlu2 %424 }
 0x4d4   :  { %427 = vst.msk [vmem:[#allocation3 + $0x8] sm:$0xff] %vm295_vm9, %v425_v31 }
 0x4ec   :  { %v430_v18 = vpop.permute.xlu0 %429 }
 0x4ed   :  { %432 = vst.msk [vmem:[#allocation3 + $0x30] sm:$0xff] %vm301_vm10, %v430_v18  ;;  %v433_v46 = vsel %vm295_vm9, %v425_v31, %v430_v18 }
 0x4ee   :  { %1332 = vmatmul.msk.f32.vlgmr.msrb.gmra.mxu2 %vm173_vm11, %v433_v46  ;;  %1333 = vmatmul.msk.f32.vlgmr.msrb.gmra.mxu3 %vm173_vm11, %v433_v46 }
 0x4ef   :  { %837 = vmatpush.msrb.mxu2 %v1555_v5  ;;  %857 = vmatpush.msrb.mxu3 %v1652_v20 }
 0x4f1   :  { %838 = vmatpush.msrb.mxu2 %v1563_v6  ;;  %858 = vmatpush.msrb.mxu3 %v1659_v21 }
 0x4f3   :  { %839 = vmatpush.msrb.mxu2 %v1572_v8  ;;  %859 = vmatpush.msrb.mxu3 %v1667_v22 }
 0x4f5   :  { %840 = vmatpush.msrb.mxu2 %v1579_v9  ;;  %860 = vmatpush.msrb.mxu3 %v1683_v23 }
 0x4f7   :  { %841 = vmatpush.msrb.mxu2 %v1594_v12  ;;  %861 = vmatpush.msrb.mxu3 %v1691_v25 }
 0x4f9   :  { %842 = vmatpush.msrb.mxu2 %v1604_v13  ;;  %862 = vmatpush.msrb.mxu3 %v1700_v26 }
 0x4fb   :  { %843 = vmatpush.msrb.mxu2 %v1611_v14  ;;  %863 = vmatpush.msrb.mxu3 %v1708_v27 }
 0x4fd   :  { %844 = vmatpush.msrb.mxu2 %v1618_v15  ;;  %864 = vmatpush.msrb.mxu3 %v1722_v28 }
 0x571   :  { %v456_v19 = vpop.f32.mrf.mxu2  ;;  %v476_v24 = vpop.f32.mrf.mxu3 }
 0x572   :  { %v457_v29 = vadd.f32 %v456_v19, %v1769_v33  ;;  %v477_v36 = vadd.f32 %v476_v24, %v1786_v44 }
 0x574   :  { %1405 = vtanh.f32 %v457_v29  ;;  %v1335_v47 = vmul.f32 -1.442695, %v477_v36  ;;  %v1334_v52 = vmul.f32 -1.442695, %v457_v29 }
 0x575   :  { %1407 = vtanh.f32 %v477_v36 }
 0x576   :  { %1409 = vpow2.f32 %v1335_v47 }
 0x57a   :  { %v1406_v37 = vpop.eup %1405 }
 0x57b   :  { %v1408_v39 = vpop.eup %1407  ;;  %521 = vrot.lane.b32.xlu1 %v1406_v37, %s1502_s2 }
 0x57c   :  { %532 = vrot.lane.b32.xlu2 %v1408_v39, %s1502_s2  ;;  %v1410_v48 = vpop.eup %1409 }
 0x57d   :  { %v501_v50 = vadd.f32 1.0, %v1410_v48 }
 0x57f   :  { %1411 = vrcp.f32 %v501_v50  ;;  %v513_v58 = vand.u32 2147483648, %v501_v50  ;;  %vm507_vm5 = vweird.f32 %v501_v50  ;;  %v511_v59 = vand.u32 2147483647, %v501_v50 }
 0x580   :  { %1413 = vpow2.f32 %v1334_v52 }
 0x581   :  { %v514_v61 = vor.u32 1.1754944e-38, %v513_v58  ;;  %vm512_vm7 = vcmp.eq.f32.partialorder %v511_v59, 8.507059e+37 }
 0x585   :  { %v1412_v51 = vpop.eup %1411 }
 0x586   :  { %v503_v54 = vmul.f32 %v1412_v51, %v501_v50  ;;  %v1414_v55 = vpop.eup %1413  ;;  %vm508_vm4 = vweird.f32 %v1412_v51 }
 0x587   :  { %v482_v56 = vadd.f32 1.0, %v1414_v55  ;;  %vm509_vm6 = vmor %vm507_vm5, %vm508_vm4 }
 0x588   :  { %v504_v33 = vsub.f32 1.0, %v503_v54 }
 0x589   :  { %1415 = vrcp.f32 %v482_v56  ;;  %v494_v16 = vand.u32 2147483648, %v482_v56  ;;  %vm488_vm12 = vweird.f32 %v482_v56  ;;  %v492_v49 = vand.u32 2147483647, %v482_v56 }
 0x58a   :  { %v505_v44 = vmul.f32 %v1412_v51, %v504_v33 }
 0x58b   :  { %v495_v53 = vor.u32 1.1754944e-38, %v494_v16  ;;  %vm493_vm14 = vcmp.eq.f32.partialorder %v492_v49, 8.507059e+37 }
 0x58c   :  { %v506_v57 = vadd.f32 %v1412_v51, %v505_v44 }
 0x58e   :  { %v510_v60 = vsel %vm509_vm6, %v1412_v51, %v506_v57 }
 0x58f   :  { %v515_v63 = vsel %vm512_vm7, %v514_v61, %v510_v60  ;;  %v1416_v0 = vpop.eup %1415 }
 0x590   :  { %v484_v2 = vmul.f32 %v1416_v0, %v482_v56  ;;  %vm489_vm8 = vweird.f32 %v1416_v0  ;;  %v530_v19 = vmul.f32 %v515_v63, %v1836_v7 }
 0x591   :  { %vm490_vm13 = vmor %vm488_vm12, %vm489_vm8 }
 0x592   :  { %v485_v3 = vsub.f32 1.0, %v484_v2 }
 0x594   :  { %v486_v10 = vmul.f32 %v1416_v0, %v485_v3 }
 0x596   :  { %v487_v11 = vadd.f32 %v1416_v0, %v486_v10 }
 0x598   :  { %v491_v17 = vsel %vm490_vm13, %v1416_v0, %v487_v11 }
 0x599   :  { %v496_v18 = vsel %vm493_vm14, %v495_v53, %v491_v17 }
 0x59a   :  { %v519_v37 = vmul.f32 %v496_v18, %v1834_v4 }
 0x5d6   :  { %v533_v62 = vpop.permute.xlu2 %532 }
 0x5d7   :  { %v535_v1 = vmul.f32 %v533_v62, %v515_v63 }
 0x5d9   :  { %537 = vrot.lane.b32.xlu1 %v535_v1, %s1502_s2 }
 0x5ed   :  { %v522_v31 = vpop.permute.xlu1 %521 }
 0x5ee   :  { %v524_v46 = vmul.f32 %v522_v31, %v496_v18 }
 0x5f0   :  { %526 = vrot.lane.b32.xlu0 %v524_v46, %s1502_s2 }
 0x64b   :  { %v538_v24 = vpop.permute.xlu1 %537 }
 0x64c   :  { %v1872_v29 = vadd.f32 %v538_v24, %v530_v19 }
 0x64e   :  { %1417 = vtanh.f32 %v1872_v29 }
 0x654   :  { %v1418_v36 = vpop.eup %1417 }
 0x655   :  { %549 = vrot.lane.b32.xlu0 %v1418_v36, %s1502_s2 }
 0x662   :  { %v527_v39 = vpop.permute.xlu0 %526 }
 0x663   :  { %v1877_v47 = vadd.f32 %v527_v39, %v519_v37 }
 0x665   :  { %1419 = vtanh.f32 %v1877_v47 }
 0x66b   :  { %v1420_v48 = vpop.eup %1419 }
 0x66c   :  { %543 = vrot.lane.b32.xlu2 %v1420_v48, %s1502_s2 }
 0x6c6   :  { %v544_v50 = vpop.permute.xlu2 %543 }
 0x6c7   :  { %v550_v7 = vpop.permute.xlu0 %549  ;;  %v546_v51 = vmul.f32 %v544_v50, %v496_v18 }
 0x6c8   :  { %v552_v52 = vmul.f32 %v550_v7, %v515_v63 }
 0x6c9   :  { %554 = vrot.lane.b32.xlu1 %v546_v51, %s1503_s21 }
 0x6ca   :  { %559 = vrot.lane.b32.xlu2 %v552_v52, %s1504_s22 }
 0x724   :  { %v560_v54 = vpop.permute.xlu2 %559 }
 0x725   :  { %562 = vst.msk [vmem:[#allocation3 + $0x28] sm:$0xff] %vm301_vm10, %v560_v54 }
 0x73b   :  { %v555_v4 = vpop.permute.xlu1 %554 }
 0x73c   :  { %557 = vst.msk [vmem:[#allocation3 + $0x10] sm:$0xff] %vm295_vm9, %v555_v4  ;;  %v563_v33 = vsel %vm295_vm9, %v555_v4, %v560_v54 }
 0x73d   :  { %1336 = vmatmul.msk.f32.vlgmr.msra.gmra.mxu2 %vm173_vm11, %v563_v33  ;;  %1337 = vmatmul.msk.f32.vlgmr.msra.gmra.mxu3 %vm173_vm11, %v563_v33 }
 0x73e   :  { %1097 = vmatpush.msra.mxu2 %v1555_v5  ;;  %1117 = vmatpush.msra.mxu3 %v1652_v20 }
 0x740   :  { %1098 = vmatpush.msra.mxu2 %v1563_v6  ;;  %1118 = vmatpush.msra.mxu3 %v1659_v21 }
 0x742   :  { %1099 = vmatpush.msra.mxu2 %v1572_v8  ;;  %1119 = vmatpush.msra.mxu3 %v1667_v22 }
 0x744   :  { %1100 = vmatpush.msra.mxu2 %v1579_v9  ;;  %1120 = vmatpush.msra.mxu3 %v1683_v23 }
 0x746   :  { %1101 = vmatpush.msra.mxu2 %v1594_v12  ;;  %1121 = vmatpush.msra.mxu3 %v1691_v25 }
 0x748   :  { %1102 = vmatpush.msra.mxu2 %v1604_v13  ;;  %1122 = vmatpush.msra.mxu3 %v1700_v26 }
 0x74a   :  { %1103 = vmatpush.msra.mxu2 %v1611_v14  ;;  %1123 = vmatpush.msra.mxu3 %v1708_v27 }
 0x74c   :  { %1104 = vmatpush.msra.mxu2 %v1618_v15  ;;  %1124 = vmatpush.msra.mxu3 %v1722_v28 }
 0x7c0   :  { %v586_v5 = vpop.f32.mrf.mxu2  ;;  %v606_v6 = vpop.f32.mrf.mxu3 }
 0x7c1   :  { %v587_v8 = vadd.f32 %v586_v5, %v1763_v30  ;;  %v607_v9 = vadd.f32 %v606_v6, %v1782_v42 }
 0x7c3   :  { %1421 = vtanh.f32 %v587_v8  ;;  %v1338_v14 = vmul.f32 -1.442695, %v587_v8  ;;  %v1339_v20 = vmul.f32 -1.442695, %v607_v9 }
 0x7c4   :  { %1423 = vtanh.f32 %v607_v9 }
 0x7c5   :  { %1425 = vpow2.f32 %v1338_v14 }
 0x7c6   :  { %1427 = vpow2.f32 %v1339_v20 }
 0x7c9   :  { %v1422_v12 = vpop.eup %1421 }
 0x7ca   :  { %v1424_v13 = vpop.eup %1423  ;;  %651 = vrot.lane.b32.xlu0 %v1422_v12, %s1502_s2 }
 0x7cb   :  { %662 = vrot.lane.b32.xlu1 %v1424_v13, %s1502_s2  ;;  %v1426_v15 = vpop.eup %1425 }
 0x7cc   :  { %v1428_v21 = vpop.eup %1427  ;;  %v612_v22 = vadd.f32 1.0, %v1426_v15 }
 0x7cd   :  { %v631_v23 = vadd.f32 1.0, %v1428_v21 }
 0x7ce   :  { %1429 = vrcp.f32 %v612_v22  ;;  %v624_v58 = vand.u32 2147483648, %v612_v22  ;;  %vm618_vm1 = vweird.f32 %v612_v22  ;;  %v622_v60 = vand.u32 2147483647, %v612_v22 }
 0x7cf   :  { %1431 = vrcp.f32 %v631_v23  ;;  %v643_v59 = vand.u32 2147483648, %v631_v23  ;;  %vm637_vm2 = vweird.f32 %v631_v23  ;;  %v641_v61 = vand.u32 2147483647, %v631_v23 }
 0x7d0   :  { %v625_v0 = vor.u32 1.1754944e-38, %v624_v58  ;;  %vm623_vm5 = vcmp.eq.f32.partialorder %v622_v60, 8.507059e+37 }
 0x7d1   :  { %v644_v1 = vor.u32 1.1754944e-38, %v643_v59  ;;  %vm642_vm6 = vcmp.eq.f32.partialorder %v641_v61, 8.507059e+37 }
 0x7d4   :  { %v1430_v25 = vpop.eup %1429 }
 0x7d5   :  { %v1432_v26 = vpop.eup %1431  ;;  %v614_v27 = vmul.f32 %v1430_v25, %v612_v22  ;;  %vm619_vm15 = vweird.f32 %v1430_v25 }
 0x7d6   :  { %v633_v28 = vmul.f32 %v1432_v26, %v631_v23  ;;  %vm638_vm0 = vweird.f32 %v1432_v26  ;;  %vm620_vm3 = vmor %vm618_vm1, %vm619_vm15 }
 0x7d7   :  { %v615_v30 = vsub.f32 1.0, %v614_v27  ;;  %vm639_vm4 = vmor %vm637_vm2, %vm638_vm0 }
 0x7d8   :  { %v634_v42 = vsub.f32 1.0, %v633_v28 }
 0x7d9   :  { %v616_v55 = vmul.f32 %v1430_v25, %v615_v30 }
 0x7da   :  { %v635_v44 = vmul.f32 %v1432_v26, %v634_v42 }
 0x7db   :  { %v617_v56 = vadd.f32 %v1430_v25, %v616_v55 }
 0x7dc   :  { %v636_v57 = vadd.f32 %v1432_v26, %v635_v44 }
 0x7dd   :  { %v621_v62 = vsel %vm620_vm3, %v1430_v25, %v617_v56 }
 0x7de   :  { %v640_v63 = vsel %vm639_vm4, %v1432_v26, %v636_v57  ;;  %v626_v3 = vsel %vm623_vm5, %v625_v0, %v621_v62 }
 0x7df   :  { %v645_v11 = vsel %vm642_vm6, %v644_v1, %v640_v63  ;;  %v649_v17 = vmul.f32 %v626_v3, %v1877_v47 }
 0x7e0   :  { %v660_v46 = vmul.f32 %v645_v11, %v1872_v29 }
 0x83c   :  { %v652_v2 = vpop.permute.xlu0 %651 }
 0x83d   :  { %v663_v10 = vpop.permute.xlu1 %662  ;;  %v654_v16 = vmul.f32 %v652_v2, %v626_v3 }
 0x83e   :  { %v665_v49 = vmul.f32 %v663_v10, %v645_v11 }
 0x83f   :  { %656 = vrot.lane.b32.xlu2 %v654_v16, %s1502_s2 }
 0x840   :  { %667 = vrot.lane.b32.xlu0 %v665_v49, %s1502_s2 }
 0x899   :  { %v657_v53 = vpop.permute.xlu2 %656 }
 0x89a   :  { %v1911_v31 = vadd.f32 %v657_v53, %v649_v17 }
 0x89c   :  { %1433 = vtanh.f32 %v1911_v31 }
 0x8a2   :  { %v1434_v18 = vpop.eup %1433 }
 0x8a3   :  { %673 = vrot.lane.b32.xlu1 %v1434_v18, %s1502_s2 }
 0x8b2   :  { %v668_v19 = vpop.permute.xlu0 %667 }
 0x8b3   :  { %v1916_v24 = vadd.f32 %v668_v19, %v660_v46 }
 0x8b5   :  { %1435 = vtanh.f32 %v1916_v24 }
 0x8bb   :  { %v1436_v36 = vpop.eup %1435 }
 0x8bc   :  { %679 = vrot.lane.b32.xlu2 %v1436_v36, %s1502_s2 }
 0x915   :  { %v674_v37 = vpop.permute.xlu1 %673 }
 0x916   :  { %v680_v39 = vpop.permute.xlu2 %679  ;;  %v676_v47 = vmul.f32 %v674_v37, %v626_v3 }
 0x917   :  { %v682_v48 = vmul.f32 %v680_v39, %v645_v11 }
 0x918   :  { %684 = vrot.lane.b32.xlu0 %v676_v47, %s1503_s21 }
 0x919   :  { %689 = vrot.lane.b32.xlu1 %v682_v48, %s1504_s22 }
 0x98a   :  { %v685_v50 = vpop.permute.xlu0 %684 }
 0x98b   :  { %687 = vst.msk [vmem:[#allocation3 + $0x18] sm:$0xff] %vm295_vm9, %v685_v50  ;;  %v690_v29 = vpop.permute.xlu1 %689 }
 0x98c   :  { %692 = vst.msk [vmem:[#allocation3 + $0x20] sm:$0xff] %vm301_vm10, %v690_v29  ;;  %v693_v7 = vsel %vm295_vm9, %v685_v50, %v690_v29 }
 0x98d   :  { %1340 = vmatmul.msk.f32.vlgmr.msra.gmra.mxu0 %vm173_vm11, %v693_v7  ;;  %1341 = vmatmul.msk.f32.vlgmr.msra.gmra.mxu1 %vm173_vm11, %v693_v7 }
 0xa0a   :  { %v716_v51 = vpop.f32.mrf.mxu0  ;;  %v736_v52 = vpop.f32.mrf.mxu1 }
 0xa0b   :  { %v717_v54 = vadd.f32 %v716_v51, %v1767_v32  ;;  %v737_v4 = vadd.f32 %v736_v52, %v1780_v41 }
 0xa0d   :  { %1437 = vtanh.f32 %v717_v54  ;;  %v1342_v6 = vmul.f32 -1.442695, %v717_v54  ;;  %v1343_v13 = vmul.f32 -1.442695, %v737_v4 }
 0xa0e   :  { %1439 = vtanh.f32 %v737_v4 }
 0xa0f   :  { %1441 = vpow2.f32 %v1342_v6 }
 0xa13   :  { %v1438_v33 = vpop.eup %1437 }
 0xa14   :  { %v1440_v5 = vpop.eup %1439  ;;  %781 = vrot.lane.b32.xlu2 %v1438_v33, %s1502_s2 }
 0xa15   :  { %792 = vrot.lane.b32.xlu0 %v1440_v5, %s1502_s2  ;;  %v1442_v8 = vpop.eup %1441 }
 0xa16   :  { %v742_v9 = vadd.f32 1.0, %v1442_v8 }
 0xa18   :  { %1443 = vrcp.f32 %v742_v9  ;;  %v754_v22 = vand.u32 2147483648, %v742_v9  ;;  %vm748_vm8 = vweird.f32 %v742_v9  ;;  %v752_v23 = vand.u32 2147483647, %v742_v9 }
 0xa19   :  { %1445 = vpow2.f32 %v1343_v13 }
 0xa1a   :  { %v755_v26 = vor.u32 1.1754944e-38, %v754_v22  ;;  %vm753_vm13 = vcmp.eq.f32.partialorder %v752_v23, 8.507059e+37 }
 0xa1e   :  { %v1444_v12 = vpop.eup %1443 }
 0xa1f   :  { %v744_v14 = vmul.f32 %v1444_v12, %v742_v9  ;;  %v1446_v41 = vpop.eup %1445  ;;  %vm749_vm7 = vweird.f32 %v1444_v12 }
 0xa20   :  { %v761_v15 = vadd.f32 1.0, %v1446_v41  ;;  %vm750_vm12 = vmor %vm748_vm8, %vm749_vm7 }
 0xa21   :  { %v745_v32 = vsub.f32 1.0, %v744_v14 }
 0xa22   :  { %1447 = vrcp.f32 %v761_v15  ;;  %v773_v58 = vand.u32 2147483648, %v761_v15  ;;  %vm767_vm15 = vweird.f32 %v761_v15  ;;  %v771_v59 = vand.u32 2147483647, %v761_v15 }
 0xa23   :  { %v746_v20 = vmul.f32 %v1444_v12, %v745_v32 }
 0xa24   :  { %v774_v61 = vor.u32 1.1754944e-38, %v773_v58  ;;  %vm772_vm1 = vcmp.eq.f32.partialorder %v771_v59, 8.507059e+37 }
 0xa25   :  { %v747_v21 = vadd.f32 %v1444_v12, %v746_v20 }
 0xa27   :  { %v751_v25 = vsel %vm750_vm12, %v1444_v12, %v747_v21 }
 0xa28   :  { %v756_v28 = vsel %vm753_vm13, %v755_v26, %v751_v25  ;;  %v1448_v42 = vpop.eup %1447 }
 0xa29   :  { %v763_v55 = vmul.f32 %v1448_v42, %v761_v15  ;;  %vm768_vm14 = vweird.f32 %v1448_v42  ;;  %v779_v1 = vmul.f32 %v756_v28, %v1911_v31 }
 0xa2a   :  { %vm769_vm0 = vmor %vm767_vm15, %vm768_vm14 }
 0xa2b   :  { %v764_v44 = vsub.f32 1.0, %v763_v55 }
 0xa2d   :  { %v765_v56 = vmul.f32 %v1448_v42, %v764_v44 }
 0xa2f   :  { %v766_v57 = vadd.f32 %v1448_v42, %v765_v56 }
 0xa31   :  { %v770_v60 = vsel %vm769_vm0, %v1448_v42, %v766_v57 }
 0xa32   :  { %v775_v63 = vsel %vm772_vm1, %v774_v61, %v770_v60 }
 0xa33   :  { %v790_v2 = vmul.f32 %v775_v63, %v1916_v24 }
 0xa6e   :  { %v782_v27 = vpop.permute.xlu2 %781 }
 0xa6f   :  { %v784_v30 = vmul.f32 %v782_v27, %v756_v28 }
 0xa71   :  { %786 = vrot.lane.b32.xlu1 %v784_v30, %s1502_s2 }
 0xa87   :  { %v793_v62 = vpop.permute.xlu0 %792 }
 0xa88   :  { %v795_v0 = vmul.f32 %v793_v62, %v775_v63 }
 0xa8a   :  { %797 = vrot.lane.b32.xlu2 %v795_v0, %s1502_s2 }
 0xae3   :  { %v787_v3 = vpop.permute.xlu1 %786 }
 0xae4   :  { %v798_v10 = vpop.permute.xlu2 %797  ;;  %v1935_v11 = vadd.f32 %v787_v3, %v779_v1 }
 0xae5   :  { %v1937_v16 = vadd.f32 %v798_v10, %v790_v2 }
 0xae6   :  { %1449 = vtanh.f32 %v1935_v11 }
 0xae7   :  { %1451 = vtanh.f32 %v1937_v16 }
 0xaec   :  { %v1450_v49 = vpop.eup %1449 }
 0xaed   :  { %v1452_v17 = vpop.eup %1451  ;;  %803 = vrot.lane.b32.xlu0 %v1450_v49, %s1502_s2 }
 0xaee   :  { %809 = vrot.lane.b32.xlu1 %v1452_v17, %s1502_s2 }
 0xb5f   :  { %v804_v53 = vpop.permute.xlu0 %803 }
 0xb60   :  { %v810_v31 = vpop.permute.xlu1 %809  ;;  %v806_v18 = vmul.f32 %v804_v53, %v756_v28 }
 0xb61   :  { %v812_v46 = vmul.f32 %v810_v31, %v775_v63 }
 0xb62   :  { %814 = vrot.lane.b32.xlu2 %v806_v18, %s1503_s21 }
 0xb63   :  { %819 = vrot.lane.b32.xlu0 %v812_v46, %s1504_s22 }
 0xbbc   :  { %v815_v19 = vpop.permute.xlu2 %814 }
 0xbbd   :  { %817 = vst.msk [vmem:[#allocation3 + $0x20] sm:$0xff] %vm295_vm9, %v815_v19 }
 0xbd5   :  { %v820_v24 = vpop.permute.xlu0 %819 }
 0xbd6   :  { %822 = vst.msk [vmem:[#allocation3 + $0x18] sm:$0xff] %vm301_vm10, %v820_v24  ;;  %v823_v36 = vsel %vm295_vm9, %v815_v19, %v820_v24 }
 0xbd7   :  { %1344 = vmatmul.msk.f32.vlgmr.msrb.gmra.mxu2 %vm173_vm11, %v823_v36  ;;  %1345 = vmatmul.msk.f32.vlgmr.msrb.gmra.mxu3 %vm173_vm11, %v823_v36 }
 0xc5a   :  { %v846_v37 = vpop.f32.mrf.mxu2  ;;  %v866_v39 = vpop.f32.mrf.mxu3 }
 0xc5b   :  { %v847_v47 = vadd.f32 %v846_v37, %v1771_v34  ;;  %v867_v48 = vadd.f32 %v866_v39, %v1778_v40 }
 0xc5d   :  { %1453 = vtanh.f32 %v847_v47  ;;  %v1347_v7 = vmul.f32 -1.442695, %v867_v48  ;;  %v1346_v4 = vmul.f32 -1.442695, %v847_v47 }
 0xc5e   :  { %1455 = vtanh.f32 %v867_v48 }
 0xc5f   :  { %1457 = vpow2.f32 %v1347_v7 }
 0xc63   :  { %v1454_v50 = vpop.eup %1453 }
 0xc64   :  { %v1456_v29 = vpop.eup %1455  ;;  %911 = vrot.lane.b32.xlu1 %v1454_v50, %s1502_s2 }
 0xc65   :  { %922 = vrot.lane.b32.xlu2 %v1456_v29, %s1502_s2  ;;  %v1458_v51 = vpop.eup %1457 }
 0xc66   :  { %v891_v52 = vadd.f32 1.0, %v1458_v51 }
 0xc68   :  { %1459 = vrcp.f32 %v891_v52  ;;  %v903_v9 = vand.u32 2147483648, %v891_v52  ;;  %vm897_vm3 = vweird.f32 %v891_v52  ;;  %v901_v12 = vand.u32 2147483647, %v891_v52 }
 0xc69   :  { %1461 = vpow2.f32 %v1346_v4 }
 0xc6a   :  { %v904_v14 = vor.u32 1.1754944e-38, %v903_v9  ;;  %vm902_vm5 = vcmp.eq.f32.partialorder %v901_v12, 8.507059e+37 }
 0xc6e   :  { %v1460_v54 = vpop.eup %1459 }
 0xc6f   :  { %v893_v33 = vmul.f32 %v1460_v54, %v891_v52  ;;  %v1462_v5 = vpop.eup %1461  ;;  %vm898_vm2 = vweird.f32 %v1460_v54 }
 0xc70   :  { %v872_v6 = vadd.f32 1.0, %v1462_v5  ;;  %vm899_vm4 = vmor %vm897_vm3, %vm898_vm2 }
 0xc71   :  { %v894_v34 = vsub.f32 1.0, %v893_v33 }
 0xc72   :  { %1463 = vrcp.f32 %v872_v6  ;;  %v884_v26 = vand.u32 2147483648, %v872_v6  ;;  %vm878_vm7 = vweird.f32 %v872_v6  ;;  %v882_v27 = vand.u32 2147483647, %v872_v6 }
 0xc73   :  { %v895_v40 = vmul.f32 %v1460_v54, %v894_v34 }
 0xc74   :  { %v885_v30 = vor.u32 1.1754944e-38, %v884_v26  ;;  %vm883_vm12 = vcmp.eq.f32.partialorder %v882_v27, 8.507059e+37 }
 0xc75   :  { %v896_v8 = vadd.f32 %v1460_v54, %v895_v40 }
 0xc77   :  { %v900_v13 = vsel %vm899_vm4, %v1460_v54, %v896_v8 }
 0xc78   :  { %v905_v20 = vsel %vm902_vm5, %v904_v14, %v900_v13  ;;  %v1464_v41 = vpop.eup %1463 }
 0xc79   :  { %v874_v21 = vmul.f32 %v1464_v41, %v872_v6  ;;  %vm879_vm6 = vweird.f32 %v1464_v41  ;;  %v920_v56 = vmul.f32 %v905_v20, %v1937_v16 }
 0xc7a   :  { %vm880_vm8 = vmor %vm878_vm7, %vm879_vm6 }
 0xc7b   :  { %v875_v22 = vsub.f32 1.0, %v874_v21 }
 0xc7d   :  { %v876_v23 = vmul.f32 %v1464_v41, %v875_v22 }
 0xc7f   :  { %v877_v25 = vadd.f32 %v1464_v41, %v876_v23 }
 0xc81   :  { %v881_v28 = vsel %vm880_vm8, %v1464_v41, %v877_v25 }
 0xc82   :  { %v886_v55 = vsel %vm883_vm12, %v885_v30, %v881_v28 }
 0xc83   :  { %v909_v60 = vmul.f32 %v886_v55, %v1935_v11 }
 0xcbf   :  { %v923_v32 = vpop.permute.xlu2 %922 }
 0xcc0   :  { %v925_v15 = vmul.f32 %v923_v32, %v905_v20 }
 0xcc2   :  { %927 = vrot.lane.b32.xlu1 %v925_v15, %s1502_s2 }
 0xcd6   :  { %v912_v42 = vpop.permute.xlu1 %911 }
 0xcd7   :  { %v914_v44 = vmul.f32 %v912_v42, %v886_v55 }
 0xcd9   :  { %916 = vrot.lane.b32.xlu0 %v914_v44, %s1502_s2 }
 0xd34   :  { %v928_v57 = vpop.permute.xlu1 %927 }
 0xd35   :  { %v1957_v58 = vadd.f32 %v928_v57, %v920_v56 }
 0xd37   :  { %1465 = vtanh.f32 %v1957_v58 }
 0xd3d   :  { %v1466_v59 = vpop.eup %1465 }
 0xd3e   :  { %939 = vrot.lane.b32.xlu0 %v1466_v59, %s1502_s2 }
 0xd4b   :  { %v917_v61 = vpop.permute.xlu0 %916 }
 0xd4c   :  { %v1962_v62 = vadd.f32 %v917_v61, %v909_v60 }
 0xd4e   :  { %1467 = vtanh.f32 %v1962_v62 }
 0xd54   :  { %v1468_v63 = vpop.eup %1467 }
 0xd55   :  { %933 = vrot.lane.b32.xlu2 %v1468_v63, %s1502_s2 }
 0xdaf   :  { %v934_v0 = vpop.permute.xlu2 %933 }
 0xdb0   :  { %v940_v1 = vpop.permute.xlu0 %939  ;;  %v936_v2 = vmul.f32 %v934_v0, %v886_v55 }
 0xdb1   :  { %v942_v3 = vmul.f32 %v940_v1, %v905_v20 }
 0xdb2   :  { %944 = vrot.lane.b32.xlu1 %v936_v2, %s1503_s21 }
 0xdb3   :  { %949 = vrot.lane.b32.xlu2 %v942_v3, %s1504_s22 }
 0xe0d   :  { %v950_v10 = vpop.permute.xlu2 %949 }
 0xe0e   :  { %952 = vst.msk [vmem:[#allocation3 + $0x10] sm:$0xff] %vm301_vm10, %v950_v10 }
 0xe24   :  { %v945_v11 = vpop.permute.xlu1 %944 }
 0xe25   :  { %947 = vst.msk [vmem:[#allocation3 + $0x28] sm:$0xff] %vm295_vm9, %v945_v11  ;;  %v953_v16 = vsel %vm295_vm9, %v945_v11, %v950_v10 }
 0xe26   :  { %1348 = vmatmul.msk.f32.vlgmr.msrb.gmra.mxu0 %vm173_vm11, %v953_v16  ;;  %1349 = vmatmul.msk.f32.vlgmr.msrb.gmra.mxu1 %vm173_vm11, %v953_v16 }
 0xea3   :  { %v976_v49 = vpop.f32.mrf.mxu0  ;;  %v996_v17 = vpop.f32.mrf.mxu1 }
 0xea4   :  { %v977_v53 = vadd.f32 %v976_v49, %v1784_v43  ;;  %v997_v31 = vadd.f32 %v996_v17, %v1775_v38 }
 0xea6   :  { %1469 = vtanh.f32 %v977_v53  ;;  %v1350_v19 = vmul.f32 -1.442695, %v977_v53  ;;  %v1351_v24 = vmul.f32 -1.442695, %v997_v31 }
 0xea7   :  { %1471 = vtanh.f32 %v997_v31 }
 0xea8   :  { %1473 = vpow2.f32 %v1350_v19 }
 0xea9   :  { %1475 = vpow2.f32 %v1351_v24 }
 0xeac   :  { %v1470_v18 = vpop.eup %1469 }
 0xead   :  { %v1472_v46 = vpop.eup %1471  ;;  %1041 = vrot.lane.b32.xlu0 %v1470_v18, %s1502_s2 }
 0xeae   :  { %1052 = vrot.lane.b32.xlu1 %v1472_v46, %s1502_s2  ;;  %v1474_v36 = vpop.eup %1473 }
 0xeaf   :  { %v1476_v37 = vpop.eup %1475  ;;  %v1002_v39 = vadd.f32 1.0, %v1474_v36 }
 0xeb0   :  { %v1021_v47 = vadd.f32 1.0, %v1476_v37 }
 0xeb1   :  { %1477 = vrcp.f32 %v1002_v39  ;;  %v1014_v33 = vand.u32 2147483648, %v1002_v39  ;;  %vm1008_vm15 = vweird.f32 %v1002_v39  ;;  %v1012_v5 = vand.u32 2147483647, %v1002_v39 }
 0xeb2   :  { %1479 = vrcp.f32 %v1021_v47  ;;  %v1033_v34 = vand.u32 2147483648, %v1021_v47  ;;  %vm1027_vm0 = vweird.f32 %v1021_v47  ;;  %v1031_v40 = vand.u32 2147483647, %v1021_v47 }
 0xeb3   :  { %v1015_v9 = vor.u32 1.1754944e-38, %v1014_v33  ;;  %vm1013_vm3 = vcmp.eq.f32.partialorder %v1012_v5, 8.507059e+37 }
 0xeb4   :  { %v1034_v12 = vor.u32 1.1754944e-38, %v1033_v34  ;;  %vm1032_vm4 = vcmp.eq.f32.partialorder %v1031_v40, 8.507059e+37 }
 0xeb7   :  { %v1478_v43 = vpop.eup %1477 }
 0xeb8   :  { %v1480_v38 = vpop.eup %1479  ;;  %v1004_v48 = vmul.f32 %v1478_v43, %v1002_v39  ;;  %vm1009_vm13 = vweird.f32 %v1478_v43 }
 0xeb9   :  { %v1023_v50 = vmul.f32 %v1480_v38, %v1021_v47  ;;  %vm1028_vm14 = vweird.f32 %v1480_v38  ;;  %vm1010_vm1 = vmor %vm1008_vm15, %vm1009_vm13 }
 0xeba   :  { %v1005_v29 = vsub.f32 1.0, %v1004_v48  ;;  %vm1029_vm2 = vmor %vm1027_vm0, %vm1028_vm14 }
 0xebb   :  { %v1024_v7 = vsub.f32 1.0, %v1023_v50 }
 0xebc   :  { %v1006_v51 = vmul.f32 %v1478_v43, %v1005_v29 }
 0xebd   :  { %v1025_v52 = vmul.f32 %v1480_v38, %v1024_v7 }
 0xebe   :  { %v1007_v54 = vadd.f32 %v1478_v43, %v1006_v51 }
 0xebf   :  { %v1026_v4 = vadd.f32 %v1480_v38, %v1025_v52 }
 0xec0   :  { %v1011_v6 = vsel %vm1010_vm1, %v1478_v43, %v1007_v54 }
 0xec1   :  { %v1030_v8 = vsel %vm1029_vm2, %v1480_v38, %v1026_v4  ;;  %v1016_v14 = vsel %vm1013_vm3, %v1015_v9, %v1011_v6 }
 0xec2   :  { %v1035_v20 = vsel %vm1032_vm4, %v1034_v12, %v1030_v8  ;;  %v1039_v21 = vmul.f32 %v1016_v14, %v1962_v62 }
 0xec3   :  { %v1050_v26 = vmul.f32 %v1035_v20, %v1957_v58 }
 0xf1f   :  { %v1042_v13 = vpop.permute.xlu0 %1041 }
 0xf20   :  { %v1053_v32 = vpop.permute.xlu1 %1052  ;;  %v1044_v41 = vmul.f32 %v1042_v13, %v1016_v14 }
 0xf21   :  { %v1055_v15 = vmul.f32 %v1053_v32, %v1035_v20  ;;  %v1227_v32 = vld [vmem:[%s2072_s3 + $0x30] sm:$0xff] }
 0xf22   :  { %1046 = vrot.lane.b32.xlu2 %v1044_v41, %s1502_s2  ;;  %v1225_v41 = vld [vmem:[%s2072_s3 + $0x20] sm:$0xff] }
 0xf23   :  { %1057 = vrot.lane.b32.xlu0 %v1055_v15, %s1502_s2 }
 0xf7c   :  { %v1047_v22 = vpop.permute.xlu2 %1046 }
 0xf7d   :  { %v1980_v23 = vadd.f32 %v1047_v22, %v1039_v21 }
 0xf7f   :  { %1481 = vtanh.f32 %v1980_v23 }
 0xf85   :  { %v1482_v25 = vpop.eup %1481 }
 0xf86   :  { %1063 = vrot.lane.b32.xlu1 %v1482_v25, %s1502_s2  ;;  %v1224_v25 = vld [vmem:[%s2072_s3 + $0x18] sm:$0xff] }
 0xf95   :  { %v1058_v27 = vpop.permute.xlu0 %1057 }
 0xf96   :  { %v1985_v28 = vadd.f32 %v1058_v27, %v1050_v26  ;;  %v1223_v26 = vld [vmem:[%s2072_s3 + $0x10] sm:$0xff]  ;;  %v1222_v27 = vld [vmem:[%s2072_s3 + $0x8] sm:$0xff] }
 0xf98   :  { %1483 = vtanh.f32 %v1985_v28 }
 0xf9e   :  { %v1484_v30 = vpop.eup %1483 }
 0xf9f   :  { %1069 = vrot.lane.b32.xlu2 %v1484_v30, %s1502_s2 }
 0xff8   :  { %v1064_v42 = vpop.permute.xlu1 %1063 }
 0xff9   :  { %v1070_v55 = vpop.permute.xlu2 %1069  ;;  %v1066_v44 = vmul.f32 %v1064_v42, %v1016_v14  ;;  %v1228_v14 = vld [vmem:[%s2072_s3 + $0x38] sm:$0xff] }
 0xffa   :  { %v1072_v56 = vmul.f32 %v1070_v55, %v1035_v20  ;;  %1265 = vmatpush.msra.mxu0 %v1228_v14  ;;  %v1226_v20 = vld [vmem:[%s2072_s3 + $0x28] sm:$0xff] }
 0xffb   :  { %1074 = vrot.lane.b32.xlu0 %v1066_v44, %s1503_s21 }
 0xffc   :  { %1079 = vrot.lane.b32.xlu1 %v1072_v56, %s1504_s22  ;;  %1266 = vmatpush.msra.mxu0 %v1227_v32  ;;  %v1215_v56 = vld [vmem:[#allocation3 + $0x10] sm:$0xff] }
 0xffe   :  { %1267 = vmatpush.msra.mxu0 %v1226_v20 }
0x1000   :  { %1268 = vmatpush.msra.mxu0 %v1225_v41 }
0x1002   :  { %1269 = vmatpush.msra.mxu0 %v1224_v25 }
0x1004   :  { %1270 = vmatpush.msra.mxu0 %v1223_v26 }
0x1006   :  { %1271 = vmatpush.msra.mxu0 %v1222_v27 }
0x106d   :  { %v1075_v57 = vpop.permute.xlu0 %1074 }
0x106e   :  { %1077 = vst.msk [vmem:[#allocation3 + $0x30] sm:$0xff] %vm295_vm9, %v1075_v57  ;;  %v1080_v58 = vpop.permute.xlu1 %1079 }
0x106f   :  { %1082 = vst.msk [vmem:[#allocation3 + $0x8] sm:$0xff] %vm301_vm10, %v1080_v58  ;;  %v1083_v59 = vsel %vm295_vm9, %v1075_v57, %v1080_v58  ;;  %v1216_v57 = vld [vmem:[#allocation3 + $0x18] sm:$0xff]  ;;  %v1217_v58 = vld [vmem:[#allocation3 + $0x20] sm:$0xff] }
0x1070   :  { %1352 = vmatmul.msk.f32.vlgmr.msra.gmra.mxu2 %vm173_vm11, %v1083_v59  ;;  %1353 = vmatmul.msk.f32.vlgmr.msra.gmra.mxu3 %vm173_vm11, %v1083_v59  ;;  %v1218_v59 = vld [vmem:[#allocation3 + $0x28] sm:$0xff] }
0x1076   :  { %v1214_v55 = vld [vmem:[#allocation3 + $0x8] sm:$0xff] }
0x10f3   :  { %v1106_v60 = vpop.f32.mrf.mxu2  ;;  %v1126_v61 = vpop.f32.mrf.mxu3 }
0x10f4   :  { %v1107_v62 = vadd.f32 %v1106_v60, %v1788_v45  ;;  %v1127_v63 = vadd.f32 %v1126_v61, %v1773_v35  ;;  %v1219_v60 = vld [vmem:[#allocation3 + $0x30] sm:$0xff] }
0x10f6   :  { %1485 = vtanh.f32 %v1107_v62  ;;  %v1355_v2 = vmul.f32 -1.442695, %v1127_v63  ;;  %v1354_v16 = vmul.f32 -1.442695, %v1107_v62  ;;  %v1372_v62 = vld [vmem:[%s2073_s4] ss:$0 sm:$0xff] }
0x10f7   :  { %1487 = vtanh.f32 %v1127_v63 }
0x10f8   :  { %1489 = vpow2.f32 %v1355_v2 }
0x10fc   :  { %v1486_v0 = vpop.eup %1485 }
0x10fd   :  { %v1488_v1 = vpop.eup %1487  ;;  %1171 = vrot.lane.b32.xlu1 %v1486_v0, %s1502_s2 }
0x10fe   :  { %1182 = vrot.lane.b32.xlu2 %v1488_v1, %s1502_s2  ;;  %v1490_v3 = vpop.eup %1489 }
0x10ff   :  { %v1151_v10 = vadd.f32 1.0, %v1490_v3 }
0x1101   :  { %1491 = vrcp.f32 %v1151_v10  ;;  %v1163_v18 = vand.u32 2147483648, %v1151_v10  ;;  %vm1157_vm6 = vweird.f32 %v1151_v10  ;;  %v1161_v46 = vand.u32 2147483647, %v1151_v10 }
0x1102   :  { %1493 = vpow2.f32 %v1354_v16 }
0x1103   :  { %v1164_v24 = vor.u32 1.1754944e-38, %v1163_v18  ;;  %vm1162_vm8 = vcmp.eq.f32.partialorder %v1161_v46, 8.507059e+37 }
0x1107   :  { %v1492_v11 = vpop.eup %1491 }
0x1108   :  { %v1153_v49 = vmul.f32 %v1492_v11, %v1151_v10  ;;  %v1494_v17 = vpop.eup %1493  ;;  %vm1158_vm5 = vweird.f32 %v1492_v11 }
0x1109   :  { %v1132_v53 = vadd.f32 1.0, %v1494_v17  ;;  %vm1159_vm7 = vmor %vm1157_vm6, %vm1158_vm5 }
0x110a   :  { %v1154_v45 = vsub.f32 1.0, %v1153_v49 }
0x110b   :  { %1495 = vrcp.f32 %v1132_v53  ;;  %v1144_v29 = vand.u32 2147483648, %v1132_v53  ;;  %vm1138_vm13 = vweird.f32 %v1132_v53  ;;  %v1142_v7 = vand.u32 2147483647, %v1132_v53 }
0x110c   :  { %v1155_v35 = vmul.f32 %v1492_v11, %v1154_v45 }
0x110d   :  { %v1145_v52 = vor.u32 1.1754944e-38, %v1144_v29  ;;  %vm1143_vm15 = vcmp.eq.f32.partialorder %v1142_v7, 8.507059e+37 }
0x110e   :  { %v1156_v31 = vadd.f32 %v1492_v11, %v1155_v35 }
0x1110   :  { %v1160_v19 = vsel %vm1159_vm7, %v1492_v11, %v1156_v31 }
0x1111   :  { %v1165_v37 = vsel %vm1162_vm8, %v1164_v24, %v1160_v19  ;;  %v1496_v39 = vpop.eup %1495 }
0x1112   :  { %v1134_v43 = vmul.f32 %v1496_v39, %v1132_v53  ;;  %vm1139_vm12 = vweird.f32 %v1496_v39  ;;  %v1180_v34 = vmul.f32 %v1165_v37, %v1985_v28  ;;  %v1221_v28 = vld [vmem:[%s2072_s3] sm:$0xff] }
0x1113   :  { %vm1140_vm14 = vmor %vm1138_vm13, %vm1139_vm12  ;;  %1272 = vmatpush.msra.mxu0 %v1221_v28 }
0x1114   :  { %v1135_v38 = vsub.f32 1.0, %v1134_v43 }
0x1116   :  { %v1136_v48 = vmul.f32 %v1496_v39, %v1135_v38 }
0x1118   :  { %v1137_v50 = vadd.f32 %v1496_v39, %v1136_v48 }
0x111a   :  { %v1141_v51 = vsel %vm1140_vm14, %v1496_v39, %v1137_v50 }
0x111b   :  { %v1146_v4 = vsel %vm1143_vm15, %v1145_v52, %v1141_v51 }
0x111c   :  { %v1169_v8 = vmul.f32 %v1146_v4, %v1980_v23 }
0x1158   :  { %v1183_v36 = vpop.permute.xlu2 %1182 }
0x1159   :  { %v1185_v47 = vmul.f32 %v1183_v36, %v1165_v37 }
0x115b   :  { %1187 = vrot.lane.b32.xlu0 %v1185_v47, %s1502_s2 }
0x116f   :  { %v1172_v54 = vpop.permute.xlu1 %1171 }
0x1170   :  { %v1174_v33 = vmul.f32 %v1172_v54, %v1146_v4 }
0x1172   :  { %1176 = vrot.lane.b32.xlu0 %v1174_v33, %s1502_s2 }
0x11cd   :  { %v1188_v5 = vpop.permute.xlu0 %1187 }
0x11ce   :  { %v1190_v40 = vadd.f32 %v1188_v5, %v1180_v34 }
0x11d0   :  { %1497 = vtanh.f32 %v1190_v40 }
0x11d6   :  { %v1498_v6 = vpop.eup %1497 }
0x11d7   :  { %1199 = vrot.lane.b32.xlu2 %v1498_v6, %s1502_s2 }
0x11e4   :  { %v1177_v9 = vpop.permute.xlu0 %1176 }
0x11e5   :  { %v1179_v12 = vadd.f32 %v1177_v9, %v1169_v8 }
0x11e7   :  { %1499 = vtanh.f32 %v1179_v12 }
0x11ed   :  { %v1500_v13 = vpop.eup %1499 }
0x11ee   :  { %1193 = vrot.lane.b32.xlu2 %v1500_v13, %s1502_s2 }
0x1231   :  { %v1200_v15 = vpop.permute.xlu2 %1199 }
0x1232   :  { %v1202_v21 = vmul.f32 %v1200_v15, %v1165_v37 }
0x1234   :  { %1209 = vrot.lane.b32.xlu1 %v1202_v21, %s1504_s22 }
0x1248   :  { %v1194_v22 = vpop.permute.xlu2 %1193 }
0x1249   :  { %v1196_v23 = vmul.f32 %v1194_v22, %v1146_v4 }
0x124b   :  { %1204 = vrot.lane.b32.xlu0 %v1196_v23, %s1503_s21 }
0x12a6   :  { %v1210_v30 = vpop.permute.xlu1 %1209 }
0x12a7   :  { %1212 = vst.msk [vmem:[#allocation3] sm:$0xff] %vm301_vm10, %v1210_v30 }
0x12ae   :  { %v1213_v42 = vld [vmem:[#allocation3] sm:$0xff] }
0x12af   :  { %1356 = vmatmul.msk.f32.vlgmr.msra.gmra.mxu0 %vm173_vm11, %v1213_v42 }
0x12b7   :  { %1357 = vmatmul.msk.f32.gmra.mxu0 %vm173_vm11, %v1214_v55 }
0x12bd   :  { %v1205_v44 = vpop.permute.xlu0 %1204 }
0x12be   :  { %1207 = vst.msk [vmem:[#allocation3 + $0x38] sm:$0xff] %vm295_vm9, %v1205_v44 }
0x12bf   :  { %1358 = vmatmul.msk.f32.gmra.mxu0 %vm173_vm11, %v1215_v56 }
0x12c5   :  { %v1220_v61 = vld [vmem:[#allocation3 + $0x38] sm:$0xff] }
0x12c7   :  { %1359 = vmatmul.msk.f32.gmra.mxu0 %vm173_vm11, %v1216_v57 }
0x12cf   :  { %1360 = vmatmul.msk.f32.gmra.mxu0 %vm173_vm11, %v1217_v58 }
0x12d7   :  { %1361 = vmatmul.msk.f32.gmra.mxu0 %vm173_vm11, %v1218_v59 }
0x12df   :  { %1362 = vmatmul.msk.f32.gmra.mxu0 %vm173_vm11, %v1219_v60 }
0x12e7   :  { %1363 = vmatmul.msk.f32.gmra.mxu0 %vm173_vm11, %v1220_v61 }
0x132c   :  { %v1274_v63 = vpop.f32.mrf.mxu0 }
0x132d   :  { %v1275_v0 = vadd.f32 %v1372_v62, %v1274_v63 }
0x132f   :  { %1298 = vst [vmem:[%s2074_s5] sm:$0xff] %v1275_v0 }
0x1334   :  { %v1277_v1 = vpop.f32.mrf.mxu0 }
0x1335   :  { %v1278_v2 = vadd.f32 %v1372_v62, %v1277_v1 }
0x1337   :  { %1299 = vst [vmem:[%s2074_s5 + $0x8] sm:$0xff] %v1278_v2 }
0x133c   :  { %v1280_v3 = vpop.f32.mrf.mxu0 }
0x133d   :  { %v1281_v10 = vadd.f32 %v1372_v62, %v1280_v3 }
0x133f   :  { %1300 = vst [vmem:[%s2074_s5 + $0x10] sm:$0xff] %v1281_v10 }
0x1344   :  { %v1283_v11 = vpop.f32.mrf.mxu0 }
0x1345   :  { %v1284_v16 = vadd.f32 %v1372_v62, %v1283_v11 }
0x1347   :  { %1301 = vst [vmem:[%s2074_s5 + $0x18] sm:$0xff] %v1284_v16 }
0x134c   :  { %v1286_v49 = vpop.f32.mrf.mxu0 }
0x134d   :  { %v1287_v45 = vadd.f32 %v1372_v62, %v1286_v49 }
0x134f   :  { %1302 = vst [vmem:[%s2074_s5 + $0x20] sm:$0xff] %v1287_v45 }
0x1354   :  { %v1289_v17 = vpop.f32.mrf.mxu0 }
0x1355   :  { %v1290_v35 = vadd.f32 %v1372_v62, %v1289_v17 }
0x1357   :  { %1303 = vst [vmem:[%s2074_s5 + $0x28] sm:$0xff] %v1290_v35 }
0x135c   :  { %v1292_v53 = vpop.f32.mrf.mxu0 }
0x135d   :  { %v1293_v31 = vadd.f32 %v1372_v62, %v1292_v53 }
0x135f   :  { %1304 = vst [vmem:[%s2074_s5 + $0x30] sm:$0xff] %v1293_v31 }
0x1364   :  { %v1295_v18 = vpop.f32.mrf.mxu0 }
0x1365   :  { %v1296_v46 = vadd.f32 %v1372_v62, %v1295_v18 }
0x1367   :  { %1305 = vst [vmem:[%s2074_s5 + $0x38] sm:$0xff] %v1296_v46 }

</bundles_post_ra>
